<compile_context>
chip_gen: v7x
topology: tpu7x:2x2x1
jax: 0.10.0
libtpu: 0.0.40
codegen_flags: <defaults>
</compile_context>

<pallas_src>
import functools
import math

import jax
import jax.numpy as jnp
from jax.experimental import pallas as pl
from jax.experimental.pallas import tpu as pltpu

# ----- small synthetic BERT config -----
VOCAB = 100
HIDDEN = 32
HEADS = 2
HEAD_DIM = HIDDEN // HEADS
LAYERS = 2
INTERMEDIATE = 64
MAX_POS = 16
TYPE_VOCAB = 2
EPS = 1e-12
HEAD_HID = 200          # nn.Linear(config.hidden_size, 200)
LANE = 128              # TPU vreg lane width; encoder matmul N padded to this.
HEAD_PAD = 256          # 200-wide head intermediate padded to 2 lanes.

# Per-layer packed weight-slab row offsets (all slabs are 128 lanes wide):
#   rows [0,32)    : Wqkv  (Q|K|V concatenated, cols 96..127 zero)
#   rows [32,64)   : Wo    (cols 32..127 zero)
#   rows [64,96)   : W1    (FFN in,  cols 64..127 zero)
#   rows [96,224)  : W2    (FFN out, rows 64..127 and cols 32..127 zero)
LW_ROWS = 3 * HIDDEN + LANE   # 224


# ---------------------------------------------------------------------------
# in-kernel helpers
# ---------------------------------------------------------------------------
def _ln(x, g, b, eps):
    mean = jnp.mean(x, axis=-1, keepdims=True)
    var = jnp.mean(jnp.square(x - mean), axis=-1, keepdims=True)
    return (x - mean) * jax.lax.rsqrt(var + eps) * g + b


def _gelu(x):
    # BERT gelu (tanh approximation) -> EUP tanh slot.
    return 0.5 * x * (1.0 + jnp.tanh(0.7978845608028654 * (x + 0.044715 * x * x * x)))


# ---------------------------------------------------------------------------
# the single fused forward kernel
#   x_emb -> emb LayerNorm -> [encoder layer] x LAYERS -> pooler(tanh)
#         -> Linear(H,200) -> Dropout(identity) -> Linear(200,1)
#   Output is a lane-dense [B*S, 128] slab; real result lives at rows b*S, col 0.
# ---------------------------------------------------------------------------
def _fused_forward_kernel(x_ref, mask_ref, embln_ref, lw_ref, lb_ref,
                          hw_ref, hb_ref, o_ref, ctx_ref, *, B, S, scale, eps):
    f32 = jnp.float32

    # --- embeddings LayerNorm (embedding dropout is identity at inference) ---
    embln = embln_ref[...]                                   # [2, H]
    x = _ln(x_ref[...], embln[0:1, :], embln[1:2, :], eps)   # [B*S, H]

    # --- additive attention-mask bias built in-kernel from the [B, S] mask ---
    neg_bias = (1.0 - mask_ref[...]) * -1e9                  # [B, S]

    # --- encoder layers, fully unrolled (LAYERS is static) ---
    for li in range(LAYERS):
        W = lw_ref[li]                                       # [224, 128] weight slab
        Bv = lb_ref[li]                                      # [8, 128]   bias/LN slab
        wqkv = W[0:HIDDEN, :]                                # [H, 128]
        wo = W[HIDDEN:2 * HIDDEN, 0:HIDDEN]                  # [H, H]
        w1 = W[2 * HIDDEN:3 * HIDDEN, :]                     # [H, 128]
        w2 = W[3 * HIDDEN:LW_ROWS, 0:HIDDEN]                 # [128, H]
        bqkv = Bv[0:1, :]
        bo = Bv[1:2, 0:HIDDEN]
        ln1g = Bv[2:3, 0:HIDDEN]
        ln1b = Bv[3:4, 0:HIDDEN]
        b1 = Bv[4:5, :]
        b2 = Bv[5:6, 0:HIDDEN]
        ln2g = Bv[6:7, 0:HIDDEN]
        ln2b = Bv[7:8, 0:HIDDEN]

        # Fused, lane-padded QKV projection for the whole [B*S, H] slab.
        qkv = jnp.dot(x, wqkv, preferred_element_type=f32) + bqkv        # [B*S, 128]

        # Per-batch, per-head attention (B and HEADS tiny -> static unroll).
        # Contexts are written into VMEM scratch, then ONE Wo matmul.
        for b in range(B):
            r0 = b * S
            bias_b = neg_bias[b:b + 1, :]                                # [1, S]
            for h in range(HEADS):
                c0 = h * HEAD_DIM
                q = qkv[r0:r0 + S, c0:c0 + HEAD_DIM]                     # [S, D]
                k = qkv[r0:r0 + S, HIDDEN + c0:HIDDEN + c0 + HEAD_DIM]   # [S, D]
                v = qkv[r0:r0 + S, 2 * HIDDEN + c0:2 * HIDDEN + c0 + HEAD_DIM]
                s = jnp.einsum("qd,kd->qk", q, k,
                               preferred_element_type=f32) * scale + bias_b
                s = s - jnp.max(s, axis=-1, keepdims=True)
                p = jnp.exp(s)
                p = p / jnp.sum(p, axis=-1, keepdims=True)   # exact divide
                ctx_ref[r0:r0 + S, c0:c0 + HEAD_DIM] = jnp.dot(
                    p, v, preferred_element_type=f32)

        attn = jnp.dot(ctx_ref[...], wo, preferred_element_type=f32) + bo
        x1 = _ln(attn + x, ln1g, ln1b, eps)

        # FFN: intermediate zero-padded to 128 lanes (exact: padded weights/bias zero).
        h1 = _gelu(jnp.dot(x1, w1, preferred_element_type=f32) + b1)     # [B*S, 128]
        h2 = jnp.dot(h1, w2, preferred_element_type=f32) + b2            # [B*S, H]
        x = _ln(h2 + x1, ln2g, ln2b, eps)

    # --- pooler + regression head, applied to ALL rows (negligible extra work);
    #     only CLS rows (b*S) are kept by the JAX wrapper.  Dropout = identity. ---
    pw = hw_ref[0:HIDDEN, 0:HIDDEN]                                      # [H, H]
    l1w = hw_ref[HIDDEN:2 * HIDDEN, :]                                   # [H, 256]
    l2w = hw_ref[2 * HIDDEN:2 * HIDDEN + HEAD_PAD, 0:LANE]               # [256, 128]
    pb = hb_ref[0:1, 0:HIDDEN]
    l1b = hb_ref[1:2, :]
    l2b = hb_ref[2:3, 0:LANE]

    pooled = jnp.tanh(jnp.dot(x, pw, preferred_element_type=f32) + pb)   # [B*S, H]
    h = jnp.dot(pooled, l1w, preferred_element_type=f32) + l1b           # [B*S, 256]
    o_ref[...] = jnp.dot(h, l2w, preferred_element_type=f32) + l2b       # [B*S, 128]


# ---------------------------------------------------------------------------
# parameter initialization (deterministic, synthetic)
# ---------------------------------------------------------------------------
def init_params(key):
    keys = iter(jax.random.split(key, 64))

    def nrm(shape, scale=0.02):
        return (scale * jax.random.normal(next(keys), shape)).astype(jnp.float32)

    def zeros(shape):
        return jnp.zeros(shape, jnp.float32)

    def ones(shape):
        return jnp.ones(shape, jnp.float32)

    params = {
        "word_emb": nrm((VOCAB, HIDDEN)),
        "pos_emb": nrm((MAX_POS, HIDDEN)),
        "type_emb": nrm((TYPE_VOCAB, HIDDEN)),
        "emb_ln_g": ones((HIDDEN,)),
        "emb_ln_b": zeros((HIDDEN,)),
        "layers": [],
        "pool_w": nrm((HIDDEN, HIDDEN)),
        "pool_b": zeros((HIDDEN,)),
        # regression head: Linear(hidden, 200) -> Dropout -> Linear(200, 1)
        "lin1_w": nrm((HIDDEN, HEAD_HID)),
        "lin1_b": zeros((HEAD_HID,)),
        "lin2_w": nrm((HEAD_HID, 1)),
        "lin2_b": zeros((1,)),
    }
    for _ in range(LAYERS):
        params["layers"].append({
            "wq": nrm((HIDDEN, HIDDEN)), "bq": zeros((HIDDEN,)),
            "wk": nrm((HIDDEN, HIDDEN)), "bk": zeros((HIDDEN,)),
            "wv": nrm((HIDDEN, HIDDEN)), "bv": zeros((HIDDEN,)),
            "wo": nrm((HIDDEN, HIDDEN)), "bo": zeros((HIDDEN,)),
            "ln1_g": ones((HIDDEN,)), "ln1_b": zeros((HIDDEN,)),
            "w1": nrm((HIDDEN, INTERMEDIATE)), "b1": zeros((INTERMEDIATE,)),
            "w2": nrm((INTERMEDIATE, HIDDEN)), "b2": zeros((HIDDEN,)),
            "ln2_g": ones((HIDDEN,)), "ln2_b": zeros((HIDDEN,)),
        })
    return params


# ---------------------------------------------------------------------------
# one-time weight prep (OUTSIDE jit): fuse QKV, zero-pad to lane widths, pack slabs
# ---------------------------------------------------------------------------
def prepare_model(params):
    def row128(vec):
        return jnp.pad(vec, (0, LANE - vec.shape[0])).reshape(1, LANE)

    layer_w, layer_b = [], []
    for layer in params["layers"]:
        wqkv = jnp.concatenate([layer["wq"], layer["wk"], layer["wv"]], axis=1)  # [H, 3H]
        wqkv = jnp.pad(wqkv, ((0, 0), (0, LANE - 3 * HIDDEN)))                   # [H, 128]
        wo = jnp.pad(layer["wo"], ((0, 0), (0, LANE - HIDDEN)))                  # [H, 128]
        w1 = jnp.pad(layer["w1"], ((0, 0), (0, LANE - INTERMEDIATE)))            # [H, 128]
        w2 = jnp.pad(layer["w2"],
                     ((0, LANE - INTERMEDIATE), (0, LANE - HIDDEN)))             # [128, 128]
        layer_w.append(jnp.concatenate([wqkv, wo, w1, w2], axis=0))              # [224, 128]

        bqkv = jnp.concatenate([layer["bq"], layer["bk"], layer["bv"]], axis=0)  # [3H]
        layer_b.append(jnp.concatenate([
            row128(bqkv), row128(layer["bo"]),
            row128(layer["ln1_g"]), row128(layer["ln1_b"]),
            row128(layer["b1"]), row128(layer["b2"]),
            row128(layer["ln2_g"]), row128(layer["ln2_b"]),
        ], axis=0))                                                              # [8, 128]

    def row_hp(vec):
        return jnp.pad(vec, (0, HEAD_PAD - vec.shape[0])).reshape(1, HEAD_PAD)

    pool_w = jnp.pad(params["pool_w"], ((0, 0), (0, HEAD_PAD - HIDDEN)))         # [32, 256]
    lin1_w = jnp.pad(params["lin1_w"], ((0, 0), (0, HEAD_PAD - HEAD_HID)))       # [32, 256]
    lin2_w = jnp.pad(params["lin2_w"],
                     ((0, HEAD_PAD - HEAD_HID), (0, HEAD_PAD - 1)))              # [256, 256]
    head_w = jnp.concatenate([pool_w, lin1_w, lin2_w], axis=0)                   # [320, 256]
    head_b = jnp.concatenate([row_hp(params["pool_b"]),
                              row_hp(params["lin1_b"]),
                              row_hp(params["lin2_b"])], axis=0)                 # [3, 256]

    return {
        "word_emb": params["word_emb"],
        "pos_emb": params["pos_emb"],
        "type_emb": params["type_emb"],
        "embln": jnp.stack([params["emb_ln_g"], params["emb_ln_b"]], axis=0),    # [2, H]
        "layer_w": jnp.stack(layer_w, axis=0),                                   # [L, 224, 128]
        "layer_b": jnp.stack(layer_b, axis=0),                                   # [L, 8, 128]
        "head_w": head_w,
        "head_b": head_b,
    }


# ---------------------------------------------------------------------------
# forward pass: embedding gather (glue) + ONE fused Pallas call
# ---------------------------------------------------------------------------
def bert_engagement_regressor(prepped, input_ids, attention_masks):
    B, S = input_ids.shape

    # embeddings (tiny gather is XLA glue; everything else runs in the fused kernel)
    x = (prepped["word_emb"][input_ids]
         + prepped["pos_emb"][:S][None, :, :]
         + prepped["type_emb"][0][None, None, :]).astype(jnp.float32)
    x = x.reshape(B * S, HIDDEN)
    mask_f = attention_masks.astype(jnp.float32)                                 # [B, S]

    ins = (x, mask_f, prepped["embln"], prepped["layer_w"], prepped["layer_b"],
           prepped["head_w"], prepped["head_b"])

    def fspec(a):
        return pl.BlockSpec(a.shape, lambda: (0,) * a.ndim)

    slab = pl.pallas_call(
        functools.partial(_fused_forward_kernel, B=B, S=S,
                          scale=1.0 / math.sqrt(HEAD_DIM), eps=EPS),
        out_shape=jax.ShapeDtypeStruct((B * S, LANE), jnp.float32),
        in_specs=[fspec(a) for a in ins],
        out_specs=pl.BlockSpec((B * S, LANE), lambda: (0, 0)),
        scratch_shapes=[pltpu.VMEM((B * S, HIDDEN), jnp.float32)],   # per-head ctx buffer
    )(*ins)

    # CLS rows (b*S), column 0 -> [B]; matches PyTorch output.squeeze().
    return slab[::S, 0]


if __name__ == "__main__":
    key = jax.random.PRNGKey(0)
    pkey, ikey = jax.random.split(key)
    params = init_params(pkey)
    prepped = prepare_model(params)          # weight fusion/padding hoisted out of jit

    B, S = 2, 8
    input_ids = jax.random.randint(ikey, (B, S), 0, VOCAB, dtype=jnp.int32)
    attention_masks = jnp.array([[1, 1, 1, 1, 1, 1, 1, 1],
                                 [1, 1, 1, 1, 1, 1, 0, 0]], dtype=jnp.int32)

    fwd = jax.jit(bert_engagement_regressor)
    out = jax.block_until_ready(fwd(prepped, input_ids, attention_masks))
    assert out.shape == (B,), out.shape
    assert bool(jnp.all(jnp.isfinite(out)))
    print("KERNEL_OK")
</pallas_src>

<mosaic_0001>
module attributes {stable_mosaic.version = 11 : i64} {
  func.func @_fused_forward_kernel(%arg0: memref<16x32xf32, #tpu.memory_space<vmem>>, %arg1: memref<2x8xf32, #tpu.memory_space<vmem>>, %arg2: memref<2x32xf32, #tpu.memory_space<vmem>>, %arg3: memref<2x224x128xf32, #tpu.memory_space<vmem>>, %arg4: memref<2x8x128xf32, #tpu.memory_space<vmem>>, %arg5: memref<320x256xf32, #tpu.memory_space<vmem>>, %arg6: memref<3x256xf32, #tpu.memory_space<vmem>>, %arg7: memref<16x128xf32, #tpu.memory_space<vmem>>, %arg8: memref<16x32xf32, #tpu.memory_space<vmem>>) attributes {dimension_semantics = [], scalar_prefetch = 0 : i64, scratch_operands = 1 : i64, tpu.core_type = #tpu.core_type<tc>} {
    %c0 = arith.constant 0 : index
    %c0_0 = arith.constant 0 : index
    %0 = vector.load %arg2[%c0, %c0_0] : memref<2x32xf32, #tpu.memory_space<vmem>>, vector<2x32xf32>
    %c0_1 = arith.constant 0 : index
    %c0_2 = arith.constant 0 : index
    %1 = vector.load %arg0[%c0_1, %c0_2] : memref<16x32xf32, #tpu.memory_space<vmem>>, vector<16x32xf32>
    %2 = vector.extract_strided_slice %0 {offsets = [0, 0], sizes = [1, 32], strides = [1, 1]} : vector<2x32xf32> to vector<1x32xf32>
    %3 = vector.extract_strided_slice %0 {offsets = [1, 0], sizes = [1, 32], strides = [1, 1]} : vector<2x32xf32> to vector<1x32xf32>
    %cst = arith.constant dense<0.000000e+00> : vector<16xf32>
    %4 = vector.multi_reduction <add>, %1, %cst [1] : vector<16x32xf32> to vector<16xf32>
    %5 = vector.shape_cast %4 : vector<16xf32> to vector<16x1xf32>
    %cst_3 = arith.constant 3.200000e+01 : f32
    %6 = vector.broadcast %cst_3 : f32 to vector<16x1xf32>
    %7 = arith.divf %5, %6 : vector<16x1xf32>
    %8 = vector.broadcast %7 : vector<16x1xf32> to vector<16x32xf32>
    %9 = arith.subf %1, %8 : vector<16x32xf32>
    %10 = arith.mulf %9, %9 : vector<16x32xf32>
    %cst_4 = arith.constant dense<0.000000e+00> : vector<16xf32>
    %11 = vector.multi_reduction <add>, %10, %cst_4 [1] : vector<16x32xf32> to vector<16xf32>
    %12 = vector.shape_cast %11 : vector<16xf32> to vector<16x1xf32>
    %cst_5 = arith.constant 3.200000e+01 : f32
    %13 = vector.broadcast %cst_5 : f32 to vector<16x1xf32>
    %14 = arith.divf %12, %13 : vector<16x1xf32>
    %15 = vector.broadcast %7 : vector<16x1xf32> to vector<16x32xf32>
    %16 = arith.subf %1, %15 : vector<16x32xf32>
    %cst_6 = arith.constant 9.99999996E-13 : f32
    %17 = vector.broadcast %cst_6 : f32 to vector<16x1xf32>
    %18 = arith.addf %14, %17 : vector<16x1xf32>
    %19 = math.rsqrt %18 : vector<16x1xf32>
    %20 = vector.broadcast %19 : vector<16x1xf32> to vector<16x32xf32>
    %21 = arith.mulf %16, %20 : vector<16x32xf32>
    %22 = vector.broadcast %2 : vector<1x32xf32> to vector<16x32xf32>
    %23 = arith.mulf %21, %22 : vector<16x32xf32>
    %24 = vector.broadcast %3 : vector<1x32xf32> to vector<16x32xf32>
    %25 = arith.addf %23, %24 : vector<16x32xf32>
    %c0_7 = arith.constant 0 : index
    %c0_8 = arith.constant 0 : index
    %26 = vector.load %arg1[%c0_7, %c0_8] : memref<2x8xf32, #tpu.memory_space<vmem>>, vector<2x8xf32>
    %cst_9 = arith.constant 1.000000e+00 : f32
    %27 = vector.broadcast %cst_9 : f32 to vector<2x8xf32>
    %28 = arith.subf %27, %26 : vector<2x8xf32>
    %cst_10 = arith.constant -1.000000e+09 : f32
    %29 = vector.broadcast %cst_10 : f32 to vector<2x8xf32>
    %30 = arith.mulf %28, %29 : vector<2x8xf32>
    %c0_11 = arith.constant 0 : index
    %c0_12 = arith.constant 0 : index
    %c0_13 = arith.constant 0 : index
    %31 = vector.load %arg3[%c0_11, %c0_12, %c0_13] : memref<2x224x128xf32, #tpu.memory_space<vmem>>, vector<1x224x128xf32>
    %32 = vector.shape_cast %31 : vector<1x224x128xf32> to vector<224x128xf32>
    %c0_14 = arith.constant 0 : index
    %c0_15 = arith.constant 0 : index
    %c0_16 = arith.constant 0 : index
    %33 = vector.load %arg4[%c0_14, %c0_15, %c0_16] : memref<2x8x128xf32, #tpu.memory_space<vmem>>, vector<1x8x128xf32>
    %34 = vector.shape_cast %33 : vector<1x8x128xf32> to vector<8x128xf32>
    %35 = vector.extract_strided_slice %32 {offsets = [0, 0], sizes = [32, 128], strides = [1, 1]} : vector<224x128xf32> to vector<32x128xf32>
    %36 = vector.extract_strided_slice %32 {offsets = [32, 0], sizes = [32, 32], strides = [1, 1]} : vector<224x128xf32> to vector<32x32xf32>
    %37 = vector.extract_strided_slice %32 {offsets = [64, 0], sizes = [32, 128], strides = [1, 1]} : vector<224x128xf32> to vector<32x128xf32>
    %38 = vector.extract_strided_slice %32 {offsets = [96, 0], sizes = [128, 32], strides = [1, 1]} : vector<224x128xf32> to vector<128x32xf32>
    %39 = vector.extract_strided_slice %34 {offsets = [0, 0], sizes = [1, 128], strides = [1, 1]} : vector<8x128xf32> to vector<1x128xf32>
    %40 = vector.extract_strided_slice %34 {offsets = [1, 0], sizes = [1, 32], strides = [1, 1]} : vector<8x128xf32> to vector<1x32xf32>
    %41 = vector.extract_strided_slice %34 {offsets = [2, 0], sizes = [1, 32], strides = [1, 1]} : vector<8x128xf32> to vector<1x32xf32>
    %42 = vector.extract_strided_slice %34 {offsets = [3, 0], sizes = [1, 32], strides = [1, 1]} : vector<8x128xf32> to vector<1x32xf32>
    %43 = vector.extract_strided_slice %34 {offsets = [4, 0], sizes = [1, 128], strides = [1, 1]} : vector<8x128xf32> to vector<1x128xf32>
    %44 = vector.extract_strided_slice %34 {offsets = [5, 0], sizes = [1, 32], strides = [1, 1]} : vector<8x128xf32> to vector<1x32xf32>
    %45 = vector.extract_strided_slice %34 {offsets = [6, 0], sizes = [1, 32], strides = [1, 1]} : vector<8x128xf32> to vector<1x32xf32>
    %46 = vector.extract_strided_slice %34 {offsets = [7, 0], sizes = [1, 32], strides = [1, 1]} : vector<8x128xf32> to vector<1x32xf32>
    %cst_17 = arith.constant dense<0.000000e+00> : vector<16x128xf32>
    %47 = tpu.matmul %25, %35, %cst_17 {dimension_numbers = #tpu.dot_dimension_numbers<[1], [0], [0], [1], [0, 0, 1, 1], [], []>} : vector<16x32xf32>, vector<32x128xf32>, vector<16x128xf32> -> vector<16x128xf32>
    %48 = vector.broadcast %39 : vector<1x128xf32> to vector<16x128xf32>
    %49 = arith.addf %47, %48 : vector<16x128xf32>
    %50 = vector.extract_strided_slice %30 {offsets = [0, 0], sizes = [1, 8], strides = [1, 1]} : vector<2x8xf32> to vector<1x8xf32>
    %51 = vector.extract_strided_slice %49 {offsets = [0, 0], sizes = [8, 16], strides = [1, 1]} : vector<16x128xf32> to vector<8x16xf32>
    %52 = vector.extract_strided_slice %49 {offsets = [0, 32], sizes = [8, 16], strides = [1, 1]} : vector<16x128xf32> to vector<8x16xf32>
    %53 = vector.extract_strided_slice %49 {offsets = [0, 64], sizes = [8, 16], strides = [1, 1]} : vector<16x128xf32> to vector<8x16xf32>
    "tpu.trace_start"() <{level = 10 : i32, message = "qd,kd->qk"}> : () -> ()
    %cst_18 = arith.constant dense<0.000000e+00> : vector<8x8xf32>
    %54 = tpu.matmul %51, %52, %cst_18 {dimension_numbers = #tpu.dot_dimension_numbers<[1], [1], [0], [0], [0, 0, 1, 0], [], []>} : vector<8x16xf32>, vector<8x16xf32>, vector<8x8xf32> -> vector<8x8xf32>
    "tpu.trace_stop"() : () -> ()
    %cst_19 = arith.constant 2.500000e-01 : f32
    %55 = vector.broadcast %cst_19 : f32 to vector<8x8xf32>
    %56 = arith.mulf %54, %55 : vector<8x8xf32>
    %57 = vector.broadcast %50 : vector<1x8xf32> to vector<8x8xf32>
    %58 = arith.addf %56, %57 : vector<8x8xf32>
    %cst_20 = arith.constant dense<0xFF800000> : vector<8xf32>
    %59 = vector.multi_reduction <maximumf>, %58, %cst_20 [1] : vector<8x8xf32> to vector<8xf32>
    %60 = vector.shape_cast %59 : vector<8xf32> to vector<8x1xf32>
    %61 = vector.broadcast %60 : vector<8x1xf32> to vector<8x8xf32>
    %62 = arith.subf %58, %61 : vector<8x8xf32>
    %63 = math.exp %62 : vector<8x8xf32>
    %cst_21 = arith.constant dense<0.000000e+00> : vector<8xf32>
    %64 = vector.multi_reduction <add>, %63, %cst_21 [1] : vector<8x8xf32> to vector<8xf32>
    %65 = vector.shape_cast %64 : vector<8xf32> to vector<8x1xf32>
    %66 = vector.broadcast %65 : vector<8x1xf32> to vector<8x8xf32>
    %67 = arith.divf %63, %66 : vector<8x8xf32>
    %cst_22 = arith.constant dense<0.000000e+00> : vector<8x16xf32>
    %68 = tpu.matmul %67, %53, %cst_22 {dimension_numbers = #tpu.dot_dimension_numbers<[1], [0], [0], [1], [0, 0, 1, 1], [], []>} : vector<8x8xf32>, vector<8x16xf32>, vector<8x16xf32> -> vector<8x16xf32>
    %c0_23 = arith.constant 0 : index
    %c0_24 = arith.constant 0 : index
    %69 = vector.load %arg8[%c0_23, %c0_24] : memref<16x32xf32, #tpu.memory_space<vmem>>, vector<8x16xf32>
    tpu.vector_store %arg8[%c0_23, %c0_24], %68 {strides = array<i32>} : memref<16x32xf32, #tpu.memory_space<vmem>>, vector<8x16xf32>,
    %70 = vector.extract_strided_slice %49 {offsets = [0, 16], sizes = [8, 16], strides = [1, 1]} : vector<16x128xf32> to vector<8x16xf32>
    %71 = vector.extract_strided_slice %49 {offsets = [0, 48], sizes = [8, 16], strides = [1, 1]} : vector<16x128xf32> to vector<8x16xf32>
    %72 = vector.extract_strided_slice %49 {offsets = [0, 80], sizes = [8, 16], strides = [1, 1]} : vector<16x128xf32> to vector<8x16xf32>
    "tpu.trace_start"() <{level = 10 : i32, message = "qd,kd->qk"}> : () -> ()
    %cst_25 = arith.constant dense<0.000000e+00> : vector<8x8xf32>
    %73 = tpu.matmul %70, %71, %cst_25 {dimension_numbers = #tpu.dot_dimension_numbers<[1], [1], [0], [0], [0, 0, 1, 0], [], []>} : vector<8x16xf32>, vector<8x16xf32>, vector<8x8xf32> -> vector<8x8xf32>
    "tpu.trace_stop"() : () -> ()
    %cst_26 = arith.constant 2.500000e-01 : f32
    %74 = vector.broadcast %cst_26 : f32 to vector<8x8xf32>
    %75 = arith.mulf %73, %74 : vector<8x8xf32>
    %76 = vector.broadcast %50 : vector<1x8xf32> to vector<8x8xf32>
    %77 = arith.addf %75, %76 : vector<8x8xf32>
    %cst_27 = arith.constant dense<0xFF800000> : vector<8xf32>
    %78 = vector.multi_reduction <maximumf>, %77, %cst_27 [1] : vector<8x8xf32> to vector<8xf32>
    %79 = vector.shape_cast %78 : vector<8xf32> to vector<8x1xf32>
    %80 = vector.broadcast %79 : vector<8x1xf32> to vector<8x8xf32>
    %81 = arith.subf %77, %80 : vector<8x8xf32>
    %82 = math.exp %81 : vector<8x8xf32>
    %cst_28 = arith.constant dense<0.000000e+00> : vector<8xf32>
    %83 = vector.multi_reduction <add>, %82, %cst_28 [1] : vector<8x8xf32> to vector<8xf32>
    %84 = vector.shape_cast %83 : vector<8xf32> to vector<8x1xf32>
    %85 = vector.broadcast %84 : vector<8x1xf32> to vector<8x8xf32>
    %86 = arith.divf %82, %85 : vector<8x8xf32>
    %cst_29 = arith.constant dense<0.000000e+00> : vector<8x16xf32>
    %87 = tpu.matmul %86, %72, %cst_29 {dimension_numbers = #tpu.dot_dimension_numbers<[1], [0], [0], [1], [0, 0, 1, 1], [], []>} : vector<8x8xf32>, vector<8x16xf32>, vector<8x16xf32> -> vector<8x16xf32>
    %c0_30 = arith.constant 0 : index
    %c16 = arith.constant 16 : index
    %88 = vector.load %arg8[%c0_30, %c16] : memref<16x32xf32, #tpu.memory_space<vmem>>, vector<8x16xf32>
    tpu.vector_store %arg8[%c0_30, %c16], %87 {strides = array<i32>} : memref<16x32xf32, #tpu.memory_space<vmem>>, vector<8x16xf32>,
    %89 = vector.extract_strided_slice %30 {offsets = [1, 0], sizes = [1, 8], strides = [1, 1]} : vector<2x8xf32> to vector<1x8xf32>
    %90 = vector.extract_strided_slice %49 {offsets = [8, 0], sizes = [8, 16], strides = [1, 1]} : vector<16x128xf32> to vector<8x16xf32>
    %91 = vector.extract_strided_slice %49 {offsets = [8, 32], sizes = [8, 16], strides = [1, 1]} : vector<16x128xf32> to vector<8x16xf32>
    %92 = vector.extract_strided_slice %49 {offsets = [8, 64], sizes = [8, 16], strides = [1, 1]} : vector<16x128xf32> to vector<8x16xf32>
    "tpu.trace_start"() <{level = 10 : i32, message = "qd,kd->qk"}> : () -> ()
    %cst_31 = arith.constant dense<0.000000e+00> : vector<8x8xf32>
    %93 = tpu.matmul %90, %91, %cst_31 {dimension_numbers = #tpu.dot_dimension_numbers<[1], [1], [0], [0], [0, 0, 1, 0], [], []>} : vector<8x16xf32>, vector<8x16xf32>, vector<8x8xf32> -> vector<8x8xf32>
    "tpu.trace_stop"() : () -> ()
    %cst_32 = arith.constant 2.500000e-01 : f32
    %94 = vector.broadcast %cst_32 : f32 to vector<8x8xf32>
    %95 = arith.mulf %93, %94 : vector<8x8xf32>
    %96 = vector.broadcast %89 : vector<1x8xf32> to vector<8x8xf32>
    %97 = arith.addf %95, %96 : vector<8x8xf32>
    %cst_33 = arith.constant dense<0xFF800000> : vector<8xf32>
    %98 = vector.multi_reduction <maximumf>, %97, %cst_33 [1] : vector<8x8xf32> to vector<8xf32>
    %99 = vector.shape_cast %98 : vector<8xf32> to vector<8x1xf32>
    %100 = vector.broadcast %99 : vector<8x1xf32> to vector<8x8xf32>
    %101 = arith.subf %97, %100 : vector<8x8xf32>
    %102 = math.exp %101 : vector<8x8xf32>
    %cst_34 = arith.constant dense<0.000000e+00> : vector<8xf32>
    %103 = vector.multi_reduction <add>, %102, %cst_34 [1] : vector<8x8xf32> to vector<8xf32>
    %104 = vector.shape_cast %103 : vector<8xf32> to vector<8x1xf32>
    %105 = vector.broadcast %104 : vector<8x1xf32> to vector<8x8xf32>
    %106 = arith.divf %102, %105 : vector<8x8xf32>
    %cst_35 = arith.constant dense<0.000000e+00> : vector<8x16xf32>
    %107 = tpu.matmul %106, %92, %cst_35 {dimension_numbers = #tpu.dot_dimension_numbers<[1], [0], [0], [1], [0, 0, 1, 1], [], []>} : vector<8x8xf32>, vector<8x16xf32>, vector<8x16xf32> -> vector<8x16xf32>
    %c8 = arith.constant 8 : index
    %c0_36 = arith.constant 0 : index
    %108 = vector.load %arg8[%c8, %c0_36] : memref<16x32xf32, #tpu.memory_space<vmem>>, vector<8x16xf32>
    tpu.vector_store %arg8[%c8, %c0_36], %107 {strides = array<i32>} : memref<16x32xf32, #tpu.memory_space<vmem>>, vector<8x16xf32>,
    %109 = vector.extract_strided_slice %49 {offsets = [8, 16], sizes = [8, 16], strides = [1, 1]} : vector<16x128xf32> to vector<8x16xf32>
    %110 = vector.extract_strided_slice %49 {offsets = [8, 48], sizes = [8, 16], strides = [1, 1]} : vector<16x128xf32> to vector<8x16xf32>
    %111 = vector.extract_strided_slice %49 {offsets = [8, 80], sizes = [8, 16], strides = [1, 1]} : vector<16x128xf32> to vector<8x16xf32>
    "tpu.trace_start"() <{level = 10 : i32, message = "qd,kd->qk"}> : () -> ()
    %cst_37 = arith.constant dense<0.000000e+00> : vector<8x8xf32>
    %112 = tpu.matmul %109, %110, %cst_37 {dimension_numbers = #tpu.dot_dimension_numbers<[1], [1], [0], [0], [0, 0, 1, 0], [], []>} : vector<8x16xf32>, vector<8x16xf32>, vector<8x8xf32> -> vector<8x8xf32>
    "tpu.trace_stop"() : () -> ()
    %cst_38 = arith.constant 2.500000e-01 : f32
    %113 = vector.broadcast %cst_38 : f32 to vector<8x8xf32>
    %114 = arith.mulf %112, %113 : vector<8x8xf32>
    %115 = vector.broadcast %89 : vector<1x8xf32> to vector<8x8xf32>
    %116 = arith.addf %114, %115 : vector<8x8xf32>
    %cst_39 = arith.constant dense<0xFF800000> : vector<8xf32>
    %117 = vector.multi_reduction <maximumf>, %116, %cst_39 [1] : vector<8x8xf32> to vector<8xf32>
    %118 = vector.shape_cast %117 : vector<8xf32> to vector<8x1xf32>
    %119 = vector.broadcast %118 : vector<8x1xf32> to vector<8x8xf32>
    %120 = arith.subf %116, %119 : vector<8x8xf32>
    %121 = math.exp %120 : vector<8x8xf32>
    %cst_40 = arith.constant dense<0.000000e+00> : vector<8xf32>
    %122 = vector.multi_reduction <add>, %121, %cst_40 [1] : vector<8x8xf32> to vector<8xf32>
    %123 = vector.shape_cast %122 : vector<8xf32> to vector<8x1xf32>
    %124 = vector.broadcast %123 : vector<8x1xf32> to vector<8x8xf32>
    %125 = arith.divf %121, %124 : vector<8x8xf32>
    %cst_41 = arith.constant dense<0.000000e+00> : vector<8x16xf32>
    %126 = tpu.matmul %125, %111, %cst_41 {dimension_numbers = #tpu.dot_dimension_numbers<[1], [0], [0], [1], [0, 0, 1, 1], [], []>} : vector<8x8xf32>, vector<8x16xf32>, vector<8x16xf32> -> vector<8x16xf32>
    %c8_42 = arith.constant 8 : index
    %c16_43 = arith.constant 16 : index
    %127 = vector.load %arg8[%c8_42, %c16_43] : memref<16x32xf32, #tpu.memory_space<vmem>>, vector<8x16xf32>
    tpu.vector_store %arg8[%c8_42, %c16_43], %126 {strides = array<i32>} : memref<16x32xf32, #tpu.memory_space<vmem>>, vector<8x16xf32>,
    %c0_44 = arith.constant 0 : index
    %c0_45 = arith.constant 0 : index
    %128 = vector.load %arg8[%c0_44, %c0_45] : memref<16x32xf32, #tpu.memory_space<vmem>>, vector<16x32xf32>
    %cst_46 = arith.constant dense<0.000000e+00> : vector<16x32xf32>
    %129 = tpu.matmul %128, %36, %cst_46 {dimension_numbers = #tpu.dot_dimension_numbers<[1], [0], [0], [1], [0, 0, 1, 1], [], []>} : vector<16x32xf32>, vector<32x32xf32>, vector<16x32xf32> -> vector<16x32xf32>
    %130 = vector.broadcast %40 : vector<1x32xf32> to vector<16x32xf32>
    %131 = arith.addf %129, %130 : vector<16x32xf32>
    %132 = arith.addf %131, %25 : vector<16x32xf32>
    %cst_47 = arith.constant dense<0.000000e+00> : vector<16xf32>
    %133 = vector.multi_reduction <add>, %132, %cst_47 [1] : vector<16x32xf32> to vector<16xf32>
    %134 = vector.shape_cast %133 : vector<16xf32> to vector<16x1xf32>
    %cst_48 = arith.constant 3.200000e+01 : f32
    %135 = vector.broadcast %cst_48 : f32 to vector<16x1xf32>
    %136 = arith.divf %134, %135 : vector<16x1xf32>
    %137 = vector.broadcast %136 : vector<16x1xf32> to vector<16x32xf32>
    %138 = arith.subf %132, %137 : vector<16x32xf32>
    %139 = arith.mulf %138, %138 : vector<16x32xf32>
    %cst_49 = arith.constant dense<0.000000e+00> : vector<16xf32>
    %140 = vector.multi_reduction <add>, %139, %cst_49 [1] : vector<16x32xf32> to vector<16xf32>
    %141 = vector.shape_cast %140 : vector<16xf32> to vector<16x1xf32>
    %cst_50 = arith.constant 3.200000e+01 : f32
    %142 = vector.broadcast %cst_50 : f32 to vector<16x1xf32>
    %143 = arith.divf %141, %142 : vector<16x1xf32>
    %144 = vector.broadcast %136 : vector<16x1xf32> to vector<16x32xf32>
    %145 = arith.subf %132, %144 : vector<16x32xf32>
    %cst_51 = arith.constant 9.99999996E-13 : f32
    %146 = vector.broadcast %cst_51 : f32 to vector<16x1xf32>
    %147 = arith.addf %143, %146 : vector<16x1xf32>
    %148 = math.rsqrt %147 : vector<16x1xf32>
    %149 = vector.broadcast %148 : vector<16x1xf32> to vector<16x32xf32>
    %150 = arith.mulf %145, %149 : vector<16x32xf32>
    %151 = vector.broadcast %41 : vector<1x32xf32> to vector<16x32xf32>
    %152 = arith.mulf %150, %151 : vector<16x32xf32>
    %153 = vector.broadcast %42 : vector<1x32xf32> to vector<16x32xf32>
    %154 = arith.addf %152, %153 : vector<16x32xf32>
    %cst_52 = arith.constant dense<0.000000e+00> : vector<16x128xf32>
    %155 = tpu.matmul %154, %37, %cst_52 {dimension_numbers = #tpu.dot_dimension_numbers<[1], [0], [0], [1], [0, 0, 1, 1], [], []>} : vector<16x32xf32>, vector<32x128xf32>, vector<16x128xf32> -> vector<16x128xf32>
    %156 = vector.broadcast %43 : vector<1x128xf32> to vector<16x128xf32>
    %157 = arith.addf %155, %156 : vector<16x128xf32>
    %cst_53 = arith.constant 5.000000e-01 : f32
    %158 = vector.broadcast %cst_53 : f32 to vector<16x128xf32>
    %159 = arith.mulf %158, %157 : vector<16x128xf32>
    %cst_54 = arith.constant 4.471500e-02 : f32
    %160 = vector.broadcast %cst_54 : f32 to vector<16x128xf32>
    %161 = arith.mulf %160, %157 : vector<16x128xf32>
    %162 = arith.mulf %161, %157 : vector<16x128xf32>
    %163 = arith.mulf %162, %157 : vector<16x128xf32>
    %164 = arith.addf %157, %163 : vector<16x128xf32>
    %cst_55 = arith.constant 0.797884583 : f32
    %165 = vector.broadcast %cst_55 : f32 to vector<16x128xf32>
    %166 = arith.mulf %165, %164 : vector<16x128xf32>
    %167 = math.tanh %166 : vector<16x128xf32>
    %cst_56 = arith.constant 1.000000e+00 : f32
    %168 = vector.broadcast %cst_56 : f32 to vector<16x128xf32>
    %169 = arith.addf %168, %167 : vector<16x128xf32>
    %170 = arith.mulf %159, %169 : vector<16x128xf32>
    %cst_57 = arith.constant dense<0.000000e+00> : vector<16x32xf32>
    %171 = tpu.matmul %170, %38, %cst_57 {dimension_numbers = #tpu.dot_dimension_numbers<[1], [0], [0], [1], [0, 0, 1, 1], [], []>} : vector<16x128xf32>, vector<128x32xf32>, vector<16x32xf32> -> vector<16x32xf32>
    %172 = vector.broadcast %44 : vector<1x32xf32> to vector<16x32xf32>
    %173 = arith.addf %171, %172 : vector<16x32xf32>
    %174 = arith.addf %173, %154 : vector<16x32xf32>
    %cst_58 = arith.constant dense<0.000000e+00> : vector<16xf32>
    %175 = vector.multi_reduction <add>, %174, %cst_58 [1] : vector<16x32xf32> to vector<16xf32>
    %176 = vector.shape_cast %175 : vector<16xf32> to vector<16x1xf32>
    %cst_59 = arith.constant 3.200000e+01 : f32
    %177 = vector.broadcast %cst_59 : f32 to vector<16x1xf32>
    %178 = arith.divf %176, %177 : vector<16x1xf32>
    %179 = vector.broadcast %178 : vector<16x1xf32> to vector<16x32xf32>
    %180 = arith.subf %174, %179 : vector<16x32xf32>
    %181 = arith.mulf %180, %180 : vector<16x32xf32>
    %cst_60 = arith.constant dense<0.000000e+00> : vector<16xf32>
    %182 = vector.multi_reduction <add>, %181, %cst_60 [1] : vector<16x32xf32> to vector<16xf32>
    %183 = vector.shape_cast %182 : vector<16xf32> to vector<16x1xf32>
    %cst_61 = arith.constant 3.200000e+01 : f32
    %184 = vector.broadcast %cst_61 : f32 to vector<16x1xf32>
    %185 = arith.divf %183, %184 : vector<16x1xf32>
    %186 = vector.broadcast %178 : vector<16x1xf32> to vector<16x32xf32>
    %187 = arith.subf %174, %186 : vector<16x32xf32>
    %cst_62 = arith.constant 9.99999996E-13 : f32
    %188 = vector.broadcast %cst_62 : f32 to vector<16x1xf32>
    %189 = arith.addf %185, %188 : vector<16x1xf32>
    %190 = math.rsqrt %189 : vector<16x1xf32>
    %191 = vector.broadcast %190 : vector<16x1xf32> to vector<16x32xf32>
    %192 = arith.mulf %187, %191 : vector<16x32xf32>
    %193 = vector.broadcast %45 : vector<1x32xf32> to vector<16x32xf32>
    %194 = arith.mulf %192, %193 : vector<16x32xf32>
    %195 = vector.broadcast %46 : vector<1x32xf32> to vector<16x32xf32>
    %196 = arith.addf %194, %195 : vector<16x32xf32>
    %c1 = arith.constant 1 : index
    %c0_63 = arith.constant 0 : index
    %c0_64 = arith.constant 0 : index
    %197 = vector.load %arg3[%c1, %c0_63, %c0_64] : memref<2x224x128xf32, #tpu.memory_space<vmem>>, vector<1x224x128xf32>
    %198 = vector.shape_cast %197 : vector<1x224x128xf32> to vector<224x128xf32>
    %c1_65 = arith.constant 1 : index
    %c0_66 = arith.constant 0 : index
    %c0_67 = arith.constant 0 : index
    %199 = vector.load %arg4[%c1_65, %c0_66, %c0_67] : memref<2x8x128xf32, #tpu.memory_space<vmem>>, vector<1x8x128xf32>
    %200 = vector.shape_cast %199 : vector<1x8x128xf32> to vector<8x128xf32>
    %201 = vector.extract_strided_slice %198 {offsets = [0, 0], sizes = [32, 128], strides = [1, 1]} : vector<224x128xf32> to vector<32x128xf32>
    %202 = vector.extract_strided_slice %198 {offsets = [32, 0], sizes = [32, 32], strides = [1, 1]} : vector<224x128xf32> to vector<32x32xf32>
    %203 = vector.extract_strided_slice %198 {offsets = [64, 0], sizes = [32, 128], strides = [1, 1]} : vector<224x128xf32> to vector<32x128xf32>
    %204 = vector.extract_strided_slice %198 {offsets = [96, 0], sizes = [128, 32], strides = [1, 1]} : vector<224x128xf32> to vector<128x32xf32>
    %205 = vector.extract_strided_slice %200 {offsets = [0, 0], sizes = [1, 128], strides = [1, 1]} : vector<8x128xf32> to vector<1x128xf32>
    %206 = vector.extract_strided_slice %200 {offsets = [1, 0], sizes = [1, 32], strides = [1, 1]} : vector<8x128xf32> to vector<1x32xf32>
    %207 = vector.extract_strided_slice %200 {offsets = [2, 0], sizes = [1, 32], strides = [1, 1]} : vector<8x128xf32> to vector<1x32xf32>
    %208 = vector.extract_strided_slice %200 {offsets = [3, 0], sizes = [1, 32], strides = [1, 1]} : vector<8x128xf32> to vector<1x32xf32>
    %209 = vector.extract_strided_slice %200 {offsets = [4, 0], sizes = [1, 128], strides = [1, 1]} : vector<8x128xf32> to vector<1x128xf32>
    %210 = vector.extract_strided_slice %200 {offsets = [5, 0], sizes = [1, 32], strides = [1, 1]} : vector<8x128xf32> to vector<1x32xf32>
    %211 = vector.extract_strided_slice %200 {offsets = [6, 0], sizes = [1, 32], strides = [1, 1]} : vector<8x128xf32> to vector<1x32xf32>
    %212 = vector.extract_strided_slice %200 {offsets = [7, 0], sizes = [1, 32], strides = [1, 1]} : vector<8x128xf32> to vector<1x32xf32>
    %cst_68 = arith.constant dense<0.000000e+00> : vector<16x128xf32>
    %213 = tpu.matmul %196, %201, %cst_68 {dimension_numbers = #tpu.dot_dimension_numbers<[1], [0], [0], [1], [0, 0, 1, 1], [], []>} : vector<16x32xf32>, vector<32x128xf32>, vector<16x128xf32> -> vector<16x128xf32>
    %214 = vector.broadcast %205 : vector<1x128xf32> to vector<16x128xf32>
    %215 = arith.addf %213, %214 : vector<16x128xf32>
    %216 = vector.extract_strided_slice %30 {offsets = [0, 0], sizes = [1, 8], strides = [1, 1]} : vector<2x8xf32> to vector<1x8xf32>
    %217 = vector.extract_strided_slice %215 {offsets = [0, 0], sizes = [8, 16], strides = [1, 1]} : vector<16x128xf32> to vector<8x16xf32>
    %218 = vector.extract_strided_slice %215 {offsets = [0, 32], sizes = [8, 16], strides = [1, 1]} : vector<16x128xf32> to vector<8x16xf32>
    %219 = vector.extract_strided_slice %215 {offsets = [0, 64], sizes = [8, 16], strides = [1, 1]} : vector<16x128xf32> to vector<8x16xf32>
    "tpu.trace_start"() <{level = 10 : i32, message = "qd,kd->qk"}> : () -> ()
    %cst_69 = arith.constant dense<0.000000e+00> : vector<8x8xf32>
    %220 = tpu.matmul %217, %218, %cst_69 {dimension_numbers = #tpu.dot_dimension_numbers<[1], [1], [0], [0], [0, 0, 1, 0], [], []>} : vector<8x16xf32>, vector<8x16xf32>, vector<8x8xf32> -> vector<8x8xf32>
    "tpu.trace_stop"() : () -> ()
    %cst_70 = arith.constant 2.500000e-01 : f32
    %221 = vector.broadcast %cst_70 : f32 to vector<8x8xf32>
    %222 = arith.mulf %220, %221 : vector<8x8xf32>
    %223 = vector.broadcast %216 : vector<1x8xf32> to vector<8x8xf32>
    %224 = arith.addf %222, %223 : vector<8x8xf32>
    %cst_71 = arith.constant dense<0xFF800000> : vector<8xf32>
    %225 = vector.multi_reduction <maximumf>, %224, %cst_71 [1] : vector<8x8xf32> to vector<8xf32>
    %226 = vector.shape_cast %225 : vector<8xf32> to vector<8x1xf32>
    %227 = vector.broadcast %226 : vector<8x1xf32> to vector<8x8xf32>
    %228 = arith.subf %224, %227 : vector<8x8xf32>
    %229 = math.exp %228 : vector<8x8xf32>
    %cst_72 = arith.constant dense<0.000000e+00> : vector<8xf32>
    %230 = vector.multi_reduction <add>, %229, %cst_72 [1] : vector<8x8xf32> to vector<8xf32>
    %231 = vector.shape_cast %230 : vector<8xf32> to vector<8x1xf32>
    %232 = vector.broadcast %231 : vector<8x1xf32> to vector<8x8xf32>
    %233 = arith.divf %229, %232 : vector<8x8xf32>
    %cst_73 = arith.constant dense<0.000000e+00> : vector<8x16xf32>
    %234 = tpu.matmul %233, %219, %cst_73 {dimension_numbers = #tpu.dot_dimension_numbers<[1], [0], [0], [1], [0, 0, 1, 1], [], []>} : vector<8x8xf32>, vector<8x16xf32>, vector<8x16xf32> -> vector<8x16xf32>
    %c0_74 = arith.constant 0 : index
    %c0_75 = arith.constant 0 : index
    %235 = vector.load %arg8[%c0_74, %c0_75] : memref<16x32xf32, #tpu.memory_space<vmem>>, vector<8x16xf32>
    tpu.vector_store %arg8[%c0_74, %c0_75], %234 {strides = array<i32>} : memref<16x32xf32, #tpu.memory_space<vmem>>, vector<8x16xf32>,
    %236 = vector.extract_strided_slice %215 {offsets = [0, 16], sizes = [8, 16], strides = [1, 1]} : vector<16x128xf32> to vector<8x16xf32>
    %237 = vector.extract_strided_slice %215 {offsets = [0, 48], sizes = [8, 16], strides = [1, 1]} : vector<16x128xf32> to vector<8x16xf32>
    %238 = vector.extract_strided_slice %215 {offsets = [0, 80], sizes = [8, 16], strides = [1, 1]} : vector<16x128xf32> to vector<8x16xf32>
    "tpu.trace_start"() <{level = 10 : i32, message = "qd,kd->qk"}> : () -> ()
    %cst_76 = arith.constant dense<0.000000e+00> : vector<8x8xf32>
    %239 = tpu.matmul %236, %237, %cst_76 {dimension_numbers = #tpu.dot_dimension_numbers<[1], [1], [0], [0], [0, 0, 1, 0], [], []>} : vector<8x16xf32>, vector<8x16xf32>, vector<8x8xf32> -> vector<8x8xf32>
    "tpu.trace_stop"() : () -> ()
    %cst_77 = arith.constant 2.500000e-01 : f32
    %240 = vector.broadcast %cst_77 : f32 to vector<8x8xf32>
    %241 = arith.mulf %239, %240 : vector<8x8xf32>
    %242 = vector.broadcast %216 : vector<1x8xf32> to vector<8x8xf32>
    %243 = arith.addf %241, %242 : vector<8x8xf32>
    %cst_78 = arith.constant dense<0xFF800000> : vector<8xf32>
    %244 = vector.multi_reduction <maximumf>, %243, %cst_78 [1] : vector<8x8xf32> to vector<8xf32>
    %245 = vector.shape_cast %244 : vector<8xf32> to vector<8x1xf32>
    %246 = vector.broadcast %245 : vector<8x1xf32> to vector<8x8xf32>
    %247 = arith.subf %243, %246 : vector<8x8xf32>
    %248 = math.exp %247 : vector<8x8xf32>
    %cst_79 = arith.constant dense<0.000000e+00> : vector<8xf32>
    %249 = vector.multi_reduction <add>, %248, %cst_79 [1] : vector<8x8xf32> to vector<8xf32>
    %250 = vector.shape_cast %249 : vector<8xf32> to vector<8x1xf32>
    %251 = vector.broadcast %250 : vector<8x1xf32> to vector<8x8xf32>
    %252 = arith.divf %248, %251 : vector<8x8xf32>
    %cst_80 = arith.constant dense<0.000000e+00> : vector<8x16xf32>
    %253 = tpu.matmul %252, %238, %cst_80 {dimension_numbers = #tpu.dot_dimension_numbers<[1], [0], [0], [1], [0, 0, 1, 1], [], []>} : vector<8x8xf32>, vector<8x16xf32>, vector<8x16xf32> -> vector<8x16xf32>
    %c0_81 = arith.constant 0 : index
    %c16_82 = arith.constant 16 : index
    %254 = vector.load %arg8[%c0_81, %c16_82] : memref<16x32xf32, #tpu.memory_space<vmem>>, vector<8x16xf32>
    tpu.vector_store %arg8[%c0_81, %c16_82], %253 {strides = array<i32>} : memref<16x32xf32, #tpu.memory_space<vmem>>, vector<8x16xf32>,
    %255 = vector.extract_strided_slice %30 {offsets = [1, 0], sizes = [1, 8], strides = [1, 1]} : vector<2x8xf32> to vector<1x8xf32>
    %256 = vector.extract_strided_slice %215 {offsets = [8, 0], sizes = [8, 16], strides = [1, 1]} : vector<16x128xf32> to vector<8x16xf32>
    %257 = vector.extract_strided_slice %215 {offsets = [8, 32], sizes = [8, 16], strides = [1, 1]} : vector<16x128xf32> to vector<8x16xf32>
    %258 = vector.extract_strided_slice %215 {offsets = [8, 64], sizes = [8, 16], strides = [1, 1]} : vector<16x128xf32> to vector<8x16xf32>
    "tpu.trace_start"() <{level = 10 : i32, message = "qd,kd->qk"}> : () -> ()
    %cst_83 = arith.constant dense<0.000000e+00> : vector<8x8xf32>
    %259 = tpu.matmul %256, %257, %cst_83 {dimension_numbers = #tpu.dot_dimension_numbers<[1], [1], [0], [0], [0, 0, 1, 0], [], []>} : vector<8x16xf32>, vector<8x16xf32>, vector<8x8xf32> -> vector<8x8xf32>
    "tpu.trace_stop"() : () -> ()
    %cst_84 = arith.constant 2.500000e-01 : f32
    %260 = vector.broadcast %cst_84 : f32 to vector<8x8xf32>
    %261 = arith.mulf %259, %260 : vector<8x8xf32>
    %262 = vector.broadcast %255 : vector<1x8xf32> to vector<8x8xf32>
    %263 = arith.addf %261, %262 : vector<8x8xf32>
    %cst_85 = arith.constant dense<0xFF800000> : vector<8xf32>
    %264 = vector.multi_reduction <maximumf>, %263, %cst_85 [1] : vector<8x8xf32> to vector<8xf32>
    %265 = vector.shape_cast %264 : vector<8xf32> to vector<8x1xf32>
    %266 = vector.broadcast %265 : vector<8x1xf32> to vector<8x8xf32>
    %267 = arith.subf %263, %266 : vector<8x8xf32>
    %268 = math.exp %267 : vector<8x8xf32>
    %cst_86 = arith.constant dense<0.000000e+00> : vector<8xf32>
    %269 = vector.multi_reduction <add>, %268, %cst_86 [1] : vector<8x8xf32> to vector<8xf32>
    %270 = vector.shape_cast %269 : vector<8xf32> to vector<8x1xf32>
    %271 = vector.broadcast %270 : vector<8x1xf32> to vector<8x8xf32>
    %272 = arith.divf %268, %271 : vector<8x8xf32>
    %cst_87 = arith.constant dense<0.000000e+00> : vector<8x16xf32>
    %273 = tpu.matmul %272, %258, %cst_87 {dimension_numbers = #tpu.dot_dimension_numbers<[1], [0], [0], [1], [0, 0, 1, 1], [], []>} : vector<8x8xf32>, vector<8x16xf32>, vector<8x16xf32> -> vector<8x16xf32>
    %c8_88 = arith.constant 8 : index
    %c0_89 = arith.constant 0 : index
    %274 = vector.load %arg8[%c8_88, %c0_89] : memref<16x32xf32, #tpu.memory_space<vmem>>, vector<8x16xf32>
    tpu.vector_store %arg8[%c8_88, %c0_89], %273 {strides = array<i32>} : memref<16x32xf32, #tpu.memory_space<vmem>>, vector<8x16xf32>,
    %275 = vector.extract_strided_slice %215 {offsets = [8, 16], sizes = [8, 16], strides = [1, 1]} : vector<16x128xf32> to vector<8x16xf32>
    %276 = vector.extract_strided_slice %215 {offsets = [8, 48], sizes = [8, 16], strides = [1, 1]} : vector<16x128xf32> to vector<8x16xf32>
    %277 = vector.extract_strided_slice %215 {offsets = [8, 80], sizes = [8, 16], strides = [1, 1]} : vector<16x128xf32> to vector<8x16xf32>
    "tpu.trace_start"() <{level = 10 : i32, message = "qd,kd->qk"}> : () -> ()
    %cst_90 = arith.constant dense<0.000000e+00> : vector<8x8xf32>
    %278 = tpu.matmul %275, %276, %cst_90 {dimension_numbers = #tpu.dot_dimension_numbers<[1], [1], [0], [0], [0, 0, 1, 0], [], []>} : vector<8x16xf32>, vector<8x16xf32>, vector<8x8xf32> -> vector<8x8xf32>
    "tpu.trace_stop"() : () -> ()
    %cst_91 = arith.constant 2.500000e-01 : f32
    %279 = vector.broadcast %cst_91 : f32 to vector<8x8xf32>
    %280 = arith.mulf %278, %279 : vector<8x8xf32>
    %281 = vector.broadcast %255 : vector<1x8xf32> to vector<8x8xf32>
    %282 = arith.addf %280, %281 : vector<8x8xf32>
    %cst_92 = arith.constant dense<0xFF800000> : vector<8xf32>
    %283 = vector.multi_reduction <maximumf>, %282, %cst_92 [1] : vector<8x8xf32> to vector<8xf32>
    %284 = vector.shape_cast %283 : vector<8xf32> to vector<8x1xf32>
    %285 = vector.broadcast %284 : vector<8x1xf32> to vector<8x8xf32>
    %286 = arith.subf %282, %285 : vector<8x8xf32>
    %287 = math.exp %286 : vector<8x8xf32>
    %cst_93 = arith.constant dense<0.000000e+00> : vector<8xf32>
    %288 = vector.multi_reduction <add>, %287, %cst_93 [1] : vector<8x8xf32> to vector<8xf32>
    %289 = vector.shape_cast %288 : vector<8xf32> to vector<8x1xf32>
    %290 = vector.broadcast %289 : vector<8x1xf32> to vector<8x8xf32>
    %291 = arith.divf %287, %290 : vector<8x8xf32>
    %cst_94 = arith.constant dense<0.000000e+00> : vector<8x16xf32>
    %292 = tpu.matmul %291, %277, %cst_94 {dimension_numbers = #tpu.dot_dimension_numbers<[1], [0], [0], [1], [0, 0, 1, 1], [], []>} : vector<8x8xf32>, vector<8x16xf32>, vector<8x16xf32> -> vector<8x16xf32>
    %c8_95 = arith.constant 8 : index
    %c16_96 = arith.constant 16 : index
    %293 = vector.load %arg8[%c8_95, %c16_96] : memref<16x32xf32, #tpu.memory_space<vmem>>, vector<8x16xf32>
    tpu.vector_store %arg8[%c8_95, %c16_96], %292 {strides = array<i32>} : memref<16x32xf32, #tpu.memory_space<vmem>>, vector<8x16xf32>,
    %c0_97 = arith.constant 0 : index
    %c0_98 = arith.constant 0 : index
    %294 = vector.load %arg8[%c0_97, %c0_98] : memref<16x32xf32, #tpu.memory_space<vmem>>, vector<16x32xf32>
    %cst_99 = arith.constant dense<0.000000e+00> : vector<16x32xf32>
    %295 = tpu.matmul %294, %202, %cst_99 {dimension_numbers = #tpu.dot_dimension_numbers<[1], [0], [0], [1], [0, 0, 1, 1], [], []>} : vector<16x32xf32>, vector<32x32xf32>, vector<16x32xf32> -> vector<16x32xf32>
    %296 = vector.broadcast %206 : vector<1x32xf32> to vector<16x32xf32>
    %297 = arith.addf %295, %296 : vector<16x32xf32>
    %298 = arith.addf %297, %196 : vector<16x32xf32>
    %cst_100 = arith.constant dense<0.000000e+00> : vector<16xf32>
    %299 = vector.multi_reduction <add>, %298, %cst_100 [1] : vector<16x32xf32> to vector<16xf32>
    %300 = vector.shape_cast %299 : vector<16xf32> to vector<16x1xf32>
    %cst_101 = arith.constant 3.200000e+01 : f32
    %301 = vector.broadcast %cst_101 : f32 to vector<16x1xf32>
    %302 = arith.divf %300, %301 : vector<16x1xf32>
    %303 = vector.broadcast %302 : vector<16x1xf32> to vector<16x32xf32>
    %304 = arith.subf %298, %303 : vector<16x32xf32>
    %305 = arith.mulf %304, %304 : vector<16x32xf32>
    %cst_102 = arith.constant dense<0.000000e+00> : vector<16xf32>
    %306 = vector.multi_reduction <add>, %305, %cst_102 [1] : vector<16x32xf32> to vector<16xf32>
    %307 = vector.shape_cast %306 : vector<16xf32> to vector<16x1xf32>
    %cst_103 = arith.constant 3.200000e+01 : f32
    %308 = vector.broadcast %cst_103 : f32 to vector<16x1xf32>
    %309 = arith.divf %307, %308 : vector<16x1xf32>
    %310 = vector.broadcast %302 : vector<16x1xf32> to vector<16x32xf32>
    %311 = arith.subf %298, %310 : vector<16x32xf32>
    %cst_104 = arith.constant 9.99999996E-13 : f32
    %312 = vector.broadcast %cst_104 : f32 to vector<16x1xf32>
    %313 = arith.addf %309, %312 : vector<16x1xf32>
    %314 = math.rsqrt %313 : vector<16x1xf32>
    %315 = vector.broadcast %314 : vector<16x1xf32> to vector<16x32xf32>
    %316 = arith.mulf %311, %315 : vector<16x32xf32>
    %317 = vector.broadcast %207 : vector<1x32xf32> to vector<16x32xf32>
    %318 = arith.mulf %316, %317 : vector<16x32xf32>
    %319 = vector.broadcast %208 : vector<1x32xf32> to vector<16x32xf32>
    %320 = arith.addf %318, %319 : vector<16x32xf32>
    %cst_105 = arith.constant dense<0.000000e+00> : vector<16x128xf32>
    %321 = tpu.matmul %320, %203, %cst_105 {dimension_numbers = #tpu.dot_dimension_numbers<[1], [0], [0], [1], [0, 0, 1, 1], [], []>} : vector<16x32xf32>, vector<32x128xf32>, vector<16x128xf32> -> vector<16x128xf32>
    %322 = vector.broadcast %209 : vector<1x128xf32> to vector<16x128xf32>
    %323 = arith.addf %321, %322 : vector<16x128xf32>
    %cst_106 = arith.constant 5.000000e-01 : f32
    %324 = vector.broadcast %cst_106 : f32 to vector<16x128xf32>
    %325 = arith.mulf %324, %323 : vector<16x128xf32>
    %cst_107 = arith.constant 4.471500e-02 : f32
    %326 = vector.broadcast %cst_107 : f32 to vector<16x128xf32>
    %327 = arith.mulf %326, %323 : vector<16x128xf32>
    %328 = arith.mulf %327, %323 : vector<16x128xf32>
    %329 = arith.mulf %328, %323 : vector<16x128xf32>
    %330 = arith.addf %323, %329 : vector<16x128xf32>
    %cst_108 = arith.constant 0.797884583 : f32
    %331 = vector.broadcast %cst_108 : f32 to vector<16x128xf32>
    %332 = arith.mulf %331, %330 : vector<16x128xf32>
    %333 = math.tanh %332 : vector<16x128xf32>
    %cst_109 = arith.constant 1.000000e+00 : f32
    %334 = vector.broadcast %cst_109 : f32 to vector<16x128xf32>
    %335 = arith.addf %334, %333 : vector<16x128xf32>
    %336 = arith.mulf %325, %335 : vector<16x128xf32>
    %cst_110 = arith.constant dense<0.000000e+00> : vector<16x32xf32>
    %337 = tpu.matmul %336, %204, %cst_110 {dimension_numbers = #tpu.dot_dimension_numbers<[1], [0], [0], [1], [0, 0, 1, 1], [], []>} : vector<16x128xf32>, vector<128x32xf32>, vector<16x32xf32> -> vector<16x32xf32>
    %338 = vector.broadcast %210 : vector<1x32xf32> to vector<16x32xf32>
    %339 = arith.addf %337, %338 : vector<16x32xf32>
    %340 = arith.addf %339, %320 : vector<16x32xf32>
    %cst_111 = arith.constant dense<0.000000e+00> : vector<16xf32>
    %341 = vector.multi_reduction <add>, %340, %cst_111 [1] : vector<16x32xf32> to vector<16xf32>
    %342 = vector.shape_cast %341 : vector<16xf32> to vector<16x1xf32>
    %cst_112 = arith.constant 3.200000e+01 : f32
    %343 = vector.broadcast %cst_112 : f32 to vector<16x1xf32>
    %344 = arith.divf %342, %343 : vector<16x1xf32>
    %345 = vector.broadcast %344 : vector<16x1xf32> to vector<16x32xf32>
    %346 = arith.subf %340, %345 : vector<16x32xf32>
    %347 = arith.mulf %346, %346 : vector<16x32xf32>
    %cst_113 = arith.constant dense<0.000000e+00> : vector<16xf32>
    %348 = vector.multi_reduction <add>, %347, %cst_113 [1] : vector<16x32xf32> to vector<16xf32>
    %349 = vector.shape_cast %348 : vector<16xf32> to vector<16x1xf32>
    %cst_114 = arith.constant 3.200000e+01 : f32
    %350 = vector.broadcast %cst_114 : f32 to vector<16x1xf32>
    %351 = arith.divf %349, %350 : vector<16x1xf32>
    %352 = vector.broadcast %344 : vector<16x1xf32> to vector<16x32xf32>
    %353 = arith.subf %340, %352 : vector<16x32xf32>
    %cst_115 = arith.constant 9.99999996E-13 : f32
    %354 = vector.broadcast %cst_115 : f32 to vector<16x1xf32>
    %355 = arith.addf %351, %354 : vector<16x1xf32>
    %356 = math.rsqrt %355 : vector<16x1xf32>
    %357 = vector.broadcast %356 : vector<16x1xf32> to vector<16x32xf32>
    %358 = arith.mulf %353, %357 : vector<16x32xf32>
    %359 = vector.broadcast %211 : vector<1x32xf32> to vector<16x32xf32>
    %360 = arith.mulf %358, %359 : vector<16x32xf32>
    %361 = vector.broadcast %212 : vector<1x32xf32> to vector<16x32xf32>
    %362 = arith.addf %360, %361 : vector<16x32xf32>
    %c0_116 = arith.constant 0 : index
    %c0_117 = arith.constant 0 : index
    %363 = vector.load %arg5[%c0_116, %c0_117] : memref<320x256xf32, #tpu.memory_space<vmem>>, vector<32x32xf32>
    %c32 = arith.constant 32 : index
    %c0_118 = arith.constant 0 : index
    %364 = vector.load %arg5[%c32, %c0_118] : memref<320x256xf32, #tpu.memory_space<vmem>>, vector<32x256xf32>
    %c64 = arith.constant 64 : index
    %c0_119 = arith.constant 0 : index
    %365 = vector.load %arg5[%c64, %c0_119] : memref<320x256xf32, #tpu.memory_space<vmem>>, vector<256x128xf32>
    %c0_120 = arith.constant 0 : index
    %c0_121 = arith.constant 0 : index
    %366 = vector.load %arg6[%c0_120, %c0_121] : memref<3x256xf32, #tpu.memory_space<vmem>>, vector<1x32xf32>
    %c1_122 = arith.constant 1 : index
    %c0_123 = arith.constant 0 : index
    %367 = vector.load %arg6[%c1_122, %c0_123] : memref<3x256xf32, #tpu.memory_space<vmem>>, vector<1x256xf32>
    %c2 = arith.constant 2 : index
    %c0_124 = arith.constant 0 : index
    %368 = vector.load %arg6[%c2, %c0_124] : memref<3x256xf32, #tpu.memory_space<vmem>>, vector<1x128xf32>
    %cst_125 = arith.constant dense<0.000000e+00> : vector<16x32xf32>
    %369 = tpu.matmul %362, %363, %cst_125 {dimension_numbers = #tpu.dot_dimension_numbers<[1], [0], [0], [1], [0, 0, 1, 1], [], []>} : vector<16x32xf32>, vector<32x32xf32>, vector<16x32xf32> -> vector<16x32xf32>
    %370 = vector.broadcast %366 : vector<1x32xf32> to vector<16x32xf32>
    %371 = arith.addf %369, %370 : vector<16x32xf32>
    %372 = math.tanh %371 : vector<16x32xf32>
    %cst_126 = arith.constant dense<0.000000e+00> : vector<16x256xf32>
    %373 = tpu.matmul %372, %364, %cst_126 {dimension_numbers = #tpu.dot_dimension_numbers<[1], [0], [0], [1], [0, 0, 1, 1], [], []>} : vector<16x32xf32>, vector<32x256xf32>, vector<16x256xf32> -> vector<16x256xf32>
    %374 = vector.broadcast %367 : vector<1x256xf32> to vector<16x256xf32>
    %375 = arith.addf %373, %374 : vector<16x256xf32>
    %cst_127 = arith.constant dense<0.000000e+00> : vector<16x128xf32>
    %376 = tpu.matmul %375, %365, %cst_127 {dimension_numbers = #tpu.dot_dimension_numbers<[1], [0], [0], [1], [0, 0, 1, 1], [], []>} : vector<16x256xf32>, vector<256x128xf32>, vector<16x128xf32> -> vector<16x128xf32>
    %377 = vector.broadcast %368 : vector<1x128xf32> to vector<16x128xf32>
    %378 = arith.addf %376, %377 : vector<16x128xf32>
    %c0_128 = arith.constant 0 : index
    %c0_129 = arith.constant 0 : index
    %379 = vector.load %arg7[%c0_128, %c0_129] : memref<16x128xf32, #tpu.memory_space<vmem>>, vector<16x128xf32>
    tpu.vector_store %arg7[%c0_128, %c0_129], %378 {strides = array<i32>} : memref<16x128xf32, #tpu.memory_space<vmem>>, vector<16x128xf32>,
    return
  }
}

</mosaic_0001>

<bundles_post_ra>
// kernel: bert_engagement_regressor.1
= control target key start
LH: loop header
LB: loop body
LE: loop exit
PB: predicated region body
PF: predicated region fallthrough
CT: control target
= control target key end

     0   :  { %12 = vsyncpa [#allocation4], 0  ;;  %s3820_s0 = inlined_call_operand.vmem [shape: f32[16,32], index: 0, kind: input, shape index: {}]   ;;  %s3821_s1 = inlined_call_operand.vmem [shape: f32[2,8], index: 1, kind: input, shape index: {}]   ;;  %s3822_s2 = inlined_call_operand.vmem [shape: f32[2,32], index: 2, kind: input, shape index: {}]   ;;  %s3823_s3 = inlined_call_operand.hbm [shape: f32[2,224,128], index: 3, kind: input, shape index: {}]   ;;  %s3824_s4 = inlined_call_operand.vmem [shape: f32[2,8,128], index: 4, kind: input, shape index: {}]   ;;  %s3825_s5 = inlined_call_operand.hbm [shape: f32[320,256], index: 5, kind: input, shape index: {}]   ;;  %s3826_s6 = inlined_call_operand.vmem [shape: f32[3,256], index: 6, kind: input, shape index: {}]   ;;  %s3827_s7 = inlined_call_operand.vmem [shape: f32[16,128], index: 7, kind: output, shape index: {}]  }
   0x1   :  { %13 = vsyncpa [#allocation6], 0  ;;  %s3415_s24 = smov [#allocation3]   ;;  %s3367_s28 = scalar_lea.hbm %s3823_s3, 7168 }
   0x2   :  { %s25_s25 = sshll.u32 %s3415_s24, 4  ;;  %p3368_p0 = scmp.ne.s32.totalorder %s3823_s3, %s3367_s28  ;;  %s26_s25 = int_to_ptr.vmem [resolvable:$true] %s25_s25 }
   0x3   :  { %p3371_p1 = scmp.lt.u32.totalorder %s3367_s28, %s3823_s3 }
   0x5   :  { %p3373_p2 = pnand %p3371_p1, %p3368_p0 }
   0x7   :  { %3376 = shalt.err (!%p3373_p2)
}
   0x8   :  { %s3377_s10 = scalar_lea.vmem %s26_s25, 7168  ;;  %p3382_p4 = scmp.lt.s32.totalorder %s26_s25, %s26_s25 }
   0x9   :  { %p3378_p3 = scmp.ne.s32.totalorder %s26_s25, %s3377_s10  ;;  %p3383_p5 = scmp.lt.s32.totalorder %s3377_s10, %s3377_s10 }
   0xb   :  { %p3384_p6 = por %p3383_p5, %p3382_p4 }
   0xd   :  { %p3385_p7 = pnand %p3384_p6, %p3378_p3 }
   0xf   :  { %3388 = shalt.err (!%p3385_p7)
}
  0x10   :  { %s3416_s11 = smov 128   ;;  %s3417_s12 = smov 8  }
  0x11   :  { %31 = dma.hbm_to_vmem [thread:$0]  %s3823_s3, 7168, %s26_s25, [#allocation4], %s3416_s11, %s3416_s11, %s3417_s12  }
  0x12   :  { %s3418_s15 = smov [#allocation5]   ;;  %s3389_s19 = scalar_lea.hbm %s3825_s5, 10240 }
  0x13   :  { %s39_s16 = sshll.u32 %s3418_s15, 4  ;;  %p3390_p8 = scmp.ne.s32.totalorder %s3825_s5, %s3389_s19  ;;  %s40_s16 = int_to_ptr.vmem [resolvable:$true] %s39_s16 }
  0x14   :  { %p3393_p9 = scmp.lt.u32.totalorder %s3389_s19, %s3825_s5 }
  0x16   :  { %p3395_p10 = pnand %p3393_p9, %p3390_p8 }
  0x18   :  { %3398 = shalt.err (!%p3395_p10)
}
  0x19   :  { %s3399_s24 = scalar_lea.vmem %s40_s16, 10240  ;;  %p3404_p12 = scmp.lt.s32.totalorder %s40_s16, %s40_s16 }
  0x1a   :  { %p3400_p11 = scmp.ne.s32.totalorder %s40_s16, %s3399_s24  ;;  %p3405_p13 = scmp.lt.s32.totalorder %s3399_s24, %s3399_s24 }
  0x1c   :  { %p3406_p0 = por %p3405_p13, %p3404_p12 }
  0x1e   :  { %p3407_p1 = pnand %p3406_p0, %p3400_p11 }
  0x20   :  { %3410 = shalt.err (!%p3407_p1)
}
  0x21   :  { %s3419_s3 = smov 256   ;;  %s3420_s25 = smov 16  }
  0x22   :  { %45 = dma.hbm_to_vmem [thread:$0]  %s3825_s5, 10240, %s40_s16, [#allocation6], %s3419_s3, %s3419_s3, %s3420_s25  }
  0x23   :  { %3411 = dma.done.wait [#allocation4], 7168  }
  0x24   :  { %3412 = vsyncadd [#allocation4], 4294960128 }
  0x25   :  { %3413 = dma.done.wait [#allocation6], 10240  }
  0x26   :  { %3414 = vsyncadd [#allocation6], 4294957056  ;;  %vm57_vm0 = vcmask 261120   ;;  %v55_v0 = vld [vmem:[%s3820_s0] sm:$0xff]  ;;  %v56_v1 = vld [vmem:[%s3820_s0 + $0x8] sm:$0xff]  ;;  %v85_v22 = vlaneseq  ;;  %v3421_v41 = vmov 0.0  }
  0x27   :  { %v58_v2 = vsel %vm57_vm0, %v55_v0, 0.0  ;;  %v61_v3 = vsel %vm57_vm0, %v56_v1, 0.0  ;;  %v100_v14 = vld [vmem:[#allocation3] sm:$0xff]  ;;  %v101_v15 = vld [vmem:[#allocation3 + $0x8] sm:$0xff]  ;;  %v102_v16 = vld [vmem:[#allocation3 + $0x10] sm:$0xff]  ;;  %2914 = vmatprep.subr.mxu1 %v3421_v41  ;;  %vm3422_vm1 = vmmov 0  }
  0x28   :  { %59 = vadd.xlane.f32.xlu0 %v58_v2  ;;  %v3130_v17 = vpack.c.bf16 %v101_v15, %v100_v14  ;;  %v103_v18 = vld [vmem:[#allocation3 + $0x18] sm:$0xff]  ;;  %v3503_v26 = vshrl.u32 %v85_v22, 7  ;;  %v54_v29 = vld [vmem:[%s3822_s2] sm:$0x3]  ;;  %2916 = vmatprep.mubr.msk.f32.mxu1 %vm3422_vm1, %v3421_v41  ;;  %s3423_s10 = smov 80   ;;  %s3424_s11 = smov 96  }
  0x29   :  { %v3134_v19 = vpack.c.bf16 %v103_v18, %v102_v16  ;;  %v3533_v42 = vld [vmem:[%s3824_s4] sm:$0xff]  ;;  %s3425_s12 = smov 112   ;;  %vm217_vm2 = vcmask 130048   ;;  %vm298_vm3 = vcmask 64512   ;;  %s3427_s15 = smov 64   ;;  %vm558_vm4 = vcmask 261248  }
  0x2a   :  { %3131 = vmatprep.subr.bf16.mxu0 %v3130_v17  ;;  %v3506_v28 = vsub.s32 0, %v3503_v26  ;;  %v3512_v30 = vsub.s32 1, %v3503_v26  ;;  %v97_v54 = vld [vmem:[%s3821_s1] sm:$0x3]  ;;  %s3426_s1 = smov 48  }
  0x2b   :  { %3133 = vmatpush3.bf16.msra.mxu0 %v3130_v17  ;;  %v98_v55 = vsub.f32 1.0, %v97_v54 }
  0x2c   :  { %62 = vadd.xlane.f32.xlu0 %v61_v3  ;;  %3135 = vmatprep.subr.bf16.mxu0 %v3134_v19  ;;  %v88_v31 = vrot.slane %v54_v29, %v3506_v28  ;;  %v94_v34 = vrot.slane %v54_v29, %v3512_v30  ;;  %v132_v43 = vrot.slane %v3533_v42, %v3506_v28 }
  0x2d   :  { %v99_v56 = vmul.f32 -1e+09, %v98_v55 }
  0x2f   :  { %3137 = vmatpush3.bf16.msra.mxu0 %v3134_v19  ;;  %v3576_v57 = vrot.slane %v99_v56, %v3506_v28 }
  0x30   :  { %2924 = vmatprep.subr.mxu0 %v3421_v41 }
  0xb5   :  { %v60_v4 = vpop.xlane.xlu0 %59 }
  0xb6   :  { %v65_v5 = vmul.f32 0.03125, %v60_v4  ;;  %v3583_v4 = vrot.slane %v99_v56, %v3512_v30 }
  0xb8   :  { %v67_v6 = vsub.f32 %v55_v0, %v65_v5 }
  0xb9   :  { %v63_v7 = vpop.xlane.xlu0 %62 }
  0xba   :  { %v66_v8 = vmul.f32 0.03125, %v63_v7  ;;  %v69_v9 = vmul.f32 %v67_v6, %v67_v6 }
  0xbc   :  { %v68_v10 = vsub.f32 %v56_v1, %v66_v8  ;;  %v71_v11 = vsel %vm57_vm0, %v69_v9, 0.0 }
  0xbd   :  { %72 = vadd.xlane.f32.xlu1 %v71_v11 }
  0xbe   :  { %v70_v12 = vmul.f32 %v68_v10, %v68_v10 }
  0xc0   :  { %v74_v13 = vsel %vm57_vm0, %v70_v12, 0.0 }
  0xc1   :  { %75 = vadd.xlane.f32.xlu1 %v74_v13 }
 0x14a   :  { %v73_v20 = vpop.xlane.xlu1 %72 }
 0x14b   :  { %v77_v21 = vmul.f32 0.03125, %v73_v20 }
 0x14d   :  { %v79_v23 = vadd.f32 1e-12, %v77_v21 }
 0x14e   :  { %v76_v24 = vpop.xlane.xlu1 %75 }
 0x14f   :  { %3303 = vrsqrt.f32 %v79_v23  ;;  %v78_v25 = vmul.f32 0.03125, %v76_v24 }
 0x151   :  { %v80_v27 = vadd.f32 1e-12, %v78_v25 }
 0x153   :  { %3305 = vrsqrt.f32 %v80_v27 }
 0x159   :  { %v3304_v32 = vpop.eup %3303 }
 0x15a   :  { %v83_v33 = vmul.f32 %v3304_v32, %v67_v6 }
 0x15c   :  { %v89_v35 = vmul.f32 %v88_v31, %v83_v33 }
 0x15d   :  { %v3306_v36 = vpop.eup %3305 }
 0x15e   :  { %v84_v37 = vmul.f32 %v3306_v36, %v68_v10  ;;  %v3516_v38 = vadd.f32 %v94_v34, %v89_v35 }
 0x160   :  { %v90_v39 = vmul.f32 %v88_v31, %v84_v37  ;;  %2911 = vmatprep.mubr.msk.f32.mxu0 %vm57_vm0, %v3516_v38 }
 0x162   :  { %v3520_v40 = vadd.f32 %v94_v34, %v90_v39 }
 0x164   :  { %2912 = vmatmul.mubr.msk.f32.vlgmr.msra.gmra.mrb[0].mxu0 %vm57_vm0, %v3520_v40 }
 0x165   :  { %2926 = vmatprep.mubr.msk.f32.mxu0 %vm3422_vm1, %v3421_v41 }
 0x237   :  { %v2913_v44 = vpop.f32.mrb[0].mxu0 }
 0x238   :  { %v205_v45 = vpop.f32.mrb[1].mxu0  ;;  %v3543_v47 = vadd.f32 %v2913_v44, %v132_v43 }
 0x239   :  { %v3537_v46 = vadd.f32 %v205_v45, %v132_v43 }
 0x23b   :  { %389 = vrot.lane.b32.xlu1 %v3537_v46, %s3423_s10  ;;  %215 = vrot.lane.b32.xlu0 %v3537_v46, %s3424_s11 }
 0x23f   :  { %387 = vrot.lane.b32.xlu1 %v3537_v46, %s3425_s12  ;;  %733 = vrot.lane.b32.xlu0 %v3543_v47, %s3423_s10 }
 0x243   :  { %561 = vrot.lane.b32.xlu1 %v3543_v47, %s3424_s11 }
 0x247   :  { %731 = vrot.lane.b32.xlu1 %v3543_v47, %s3425_s12 }
 0x2ad   :  { %v390_v48 = vpop.permute.xlu1 %389  ;;  %v216_v49 = vpop.permute.xlu0 %215 }
 0x2ae   :  { %2915 = vmatpush3.xpose.msk.msra.mxu1 %vm217_vm2, %v216_v49  ;;  %2925 = vmatpush3.xpose.msk.msra.mxu0 %vm217_vm2, %v390_v48 }
 0x2af   :  { %2934 = vmatprep.subr.mxu0 %v3421_v41  ;;  %2919 = vmatprep.subr.mxu1 %v3421_v41 }
 0x2b1   :  { %v388_v50 = vpop.permute.xlu1 %387  ;;  %2917 = vmatmul.mubr.msk.f32.vlgmr.msra.gmra.mrb[0].mxu1 %vm217_vm2, %v3537_v46  ;;  %v734_v52 = vpop.permute.xlu0 %733 }
 0x2b2   :  { %2927 = vmatmul.mubr.msk.f32.vlgmr.msra.gmra.mrb[2].mxu0 %vm217_vm2, %v388_v50  ;;  %2921 = vmatprep.mubr.msk.f32.mxu1 %vm3422_vm1, %v3421_v41 }
 0x2b3   :  { %2936 = vmatprep.mubr.msk.f32.mxu0 %vm3422_vm1, %v3421_v41 }
 0x2b5   :  { %v562_v51 = vpop.permute.xlu1 %561 }
 0x2b6   :  { %2935 = vmatpush3.xpose.msk.msra.mxu0 %vm217_vm2, %v562_v51 }
 0x2b7   :  { %2944 = vmatprep.subr.mxu0 %v3421_v41 }
 0x2b9   :  { %2937 = vmatmul.mubr.msk.f32.vlgmr.msra.gmra.mrb[4].mxu0 %vm217_vm2, %v3543_v47  ;;  %v732_v53 = vpop.permute.xlu1 %731 }
 0x2ba   :  { %2945 = vmatpush3.xpose.msk.msra.mxu0 %vm217_vm2, %v734_v52  ;;  %2946 = vmatprep.mubr.msk.f32.mxu0 %vm3422_vm1, %v3421_v41 }
 0x2bd   :  { %2947 = vmatmul.mubr.msk.f32.vlgmr.msra.gmra.mrb[6].mxu0 %vm217_vm2, %v732_v53 }
 0x384   :  { %v288_v58 = vpop.f32.mrb[0].mxu1 }
 0x385   :  { %v292_v59 = vmul.f32 0.25, %v288_v58  ;;  %v2918_v60 = vpop.f32.mrb[1].mxu1  ;;  %v461_v61 = vpop.f32.mrb[2].mxu0 }
 0x386   :  { %v465_v62 = vmul.f32 0.25, %v461_v61  ;;  %v2928_v63 = vpop.f32.mrb[3].mxu0 }
 0x387   :  { %v297_v0 = vadd.f32 %v3576_v57, %v292_v59 }
 0x388   :  { %v466_v1 = vadd.f32 %v465_v62, %v3576_v57 }
 0x389   :  { %v299_v2 = vsel %vm298_vm3, %v297_v0, -inf }
 0x38a   :  { %300 = vmax.xlane.f32.xlu0 %v299_v2  ;;  %v467_v3 = vsel %vm298_vm3, %v466_v1, -inf  ;;  %v105_v2 = vld [vmem:[#allocation3 + $0x28] sm:$0xff] }
 0x38b   :  { %468 = vmax.xlane.f32.xlu1 %v467_v3 }
 0x38c   :  { %v633_v5 = vpop.f32.mrb[4].mxu0 }
 0x38d   :  { %v637_v6 = vmul.f32 0.25, %v633_v5  ;;  %v2938_v7 = vpop.f32.mrb[5].mxu0  ;;  %v106_v5 = vld [vmem:[#allocation3 + $0x30] sm:$0xff] }
 0x38f   :  { %v642_v8 = vadd.f32 %v3583_v4, %v637_v6  ;;  %v107_v6 = vld [vmem:[#allocation3 + $0x38] sm:$0xff] }
 0x390   :  { %v805_v9 = vpop.f32.mrb[6].mxu0  ;;  %v3142_v7 = vpack.c.bf16 %v107_v6, %v106_v5  ;;  %v116_v6 = vld [vmem:[#allocation3 + $0x80] sm:$0xff] }
 0x391   :  { %v809_v10 = vmul.f32 0.25, %v805_v9  ;;  %v2948_v11 = vpop.f32.mrb[7].mxu0  ;;  %v643_v12 = vsel %vm298_vm3, %v642_v8, -inf }
 0x392   :  { %644 = vmax.xlane.f32.xlu0 %v643_v12 }
 0x393   :  { %v810_v13 = vadd.f32 %v809_v10, %v3583_v4 }
 0x395   :  { %v811_v14 = vsel %vm298_vm3, %v810_v13, -inf }
 0x396   :  { %812 = vmax.xlane.f32.xlu0 %v811_v14  ;;  %v908_v14 = vrot.slane %v3533_v42, %v3512_v30 }
 0x417   :  { %v301_v15 = vpop.xlane.xlu0 %300 }
 0x418   :  { %v302_v16 = vsub.f32 %v297_v0, %v301_v15  ;;  %v469_v17 = vpop.xlane.xlu1 %468 }
 0x419   :  { %v470_v18 = vsub.f32 %v466_v1, %v469_v17  ;;  %v104_v1 = vld [vmem:[#allocation3 + $0x20] sm:$0xff] }
 0x41a   :  { %v303_v19 = vmul.f32 1.442695, %v302_v16  ;;  %v3138_v3 = vpack.c.bf16 %v105_v2, %v104_v1  ;;  %v114_v2 = vld [vmem:[#allocation3 + $0x70] sm:$0xff] }
 0x41b   :  { %v471_v20 = vmul.f32 1.442695, %v470_v18 }
 0x41c   :  { %3307 = vpow2.f32 %v303_v19  ;;  %3139 = vmatprep.subr.bf16.mxu0 %v3138_v3 }
 0x41d   :  { %3309 = vpow2.f32 %v471_v20  ;;  %3141 = vmatpush3.bf16.msra.mxu0 %v3138_v3  ;;  %v115_v3 = vld [vmem:[#allocation3 + $0x78] sm:$0xff] }
 0x41e   :  { %3143 = vmatprep.subr.bf16.mxu0 %v3142_v7  ;;  %v3158_v5 = vpack.c.bf16 %v115_v3, %v114_v2 }
 0x41f   :  { %v645_v21 = vpop.xlane.xlu0 %644 }
 0x420   :  { %v646_v22 = vsub.f32 %v642_v8, %v645_v21 }
 0x421   :  { %3145 = vmatpush3.bf16.msra.mxu0 %v3142_v7  ;;  %v117_v7 = vld [vmem:[#allocation3 + $0x88] sm:$0xff] }
 0x422   :  { %v647_v23 = vmul.f32 1.442695, %v646_v22 }
 0x423   :  { %v813_v33 = vpop.xlane.xlu0 %812 }
 0x424   :  { %3311 = vpow2.f32 %v647_v23  ;;  %v814_v34 = vsub.f32 %v810_v13, %v813_v33 }
 0x426   :  { %v3308_v24 = vpop.eup %3307  ;;  %v815_v35 = vmul.f32 1.442695, %v814_v34 }
 0x427   :  { %v3310_v25 = vpop.eup %3309  ;;  %v305_v27 = vsel %vm298_vm3, %v3308_v24, 0.0 }
 0x428   :  { %306 = vadd.xlane.f32.xlu0 %v305_v27  ;;  %v473_v29 = vsel %vm298_vm3, %v3310_v25, 0.0  ;;  %3313 = vpow2.f32 %v815_v35  ;;  %v109_v35 = vld [vmem:[#allocation3 + $0x48] sm:$0xff] }
 0x429   :  { %474 = vadd.xlane.f32.xlu1 %v473_v29 }
 0x42e   :  { %v3312_v31 = vpop.eup %3311 }
 0x42f   :  { %v649_v32 = vsel %vm298_vm3, %v3312_v31, 0.0 }
 0x430   :  { %650 = vadd.xlane.f32.xlu0 %v649_v32 }
 0x432   :  { %v3314_v36 = vpop.eup %3313 }
 0x433   :  { %v817_v37 = vsel %vm298_vm3, %v3314_v36, 0.0 }
 0x43a   :  { %478 = vrot.lane.b32.xlu1 %v3537_v46, %s3426_s1 }
 0x43e   :  { %654 = vrot.lane.b32.xlu1 %v3543_v47, %s3427_s15 }
 0x446   :  { %310 = vrot.lane.b32.xlu0 %v3537_v46, %s3427_s15 }
 0x462   :  { %818 = vadd.xlane.f32.xlu1 %v817_v37  ;;  %v110_v37 = vld [vmem:[#allocation3 + $0x50] sm:$0xff] }
 0x473   :  { %822 = vrot.lane.b32.xlu1 %v3543_v47, %s3426_s1 }
 0x4b5   :  { %v307_v39 = vpop.xlane.xlu0 %306 }
 0x4b6   :  { %3315 = vrcp.f32 %v307_v39  ;;  %v475_v43 = vpop.xlane.xlu1 %474  ;;  %v111_v39 = vld [vmem:[#allocation3 + $0x58] sm:$0xff] }
 0x4b7   :  { %3317 = vrcp.f32 %v475_v43  ;;  %v3150_v43 = vpack.c.bf16 %v111_v39, %v110_v37 }
 0x4ba   :  { %v479_v46 = vpop.permute.xlu1 %478 }
 0x4bd   :  { %v651_v44 = vpop.xlane.xlu0 %650 }
 0x4be   :  { %3319 = vrcp.f32 %v651_v44  ;;  %v655_v51 = vpop.permute.xlu1 %654  ;;  %v112_v44 = vld [vmem:[#allocation3 + $0x60] sm:$0xff] }
 0x4c0   :  { %v3316_v45 = vpop.eup %3315 }
 0x4c1   :  { %v309_v48 = vmul.f32 %v3316_v45, %v3308_v24  ;;  %v311_v49 = vpop.permute.xlu0 %310  ;;  %v3318_v50 = vpop.eup %3317  ;;  %v113_v45 = vld [vmem:[#allocation3 + $0x68] sm:$0xff] }
 0x4c2   :  { %2920 = vmatpush3.msra.mxu1 %v311_v49  ;;  %v477_v47 = vmul.f32 %v3318_v50, %v3310_v25 }
 0x4c3   :  { %2922 = vmatmul.mubr.msk.f32.vlgmr.msra.gmra.mrb[2].mxu1 %vm298_vm3, %v309_v48  ;;  %2929 = vmatprep.subr.mxu1 %v3421_v41  ;;  %v3154_v48 = vpack.c.bf16 %v113_v45, %v112_v44 }
 0x4c4   :  { %2930 = vmatpush3.msra.mxu1 %v479_v46  ;;  %2931 = vmatprep.mubr.msk.f32.mxu1 %vm3422_vm1, %v3421_v41 }
 0x4c5   :  { %2939 = vmatprep.subr.mxu1 %v3421_v41 }
 0x4c7   :  { %2932 = vmatmul.mubr.msk.f32.vlgmr.msra.gmra.mrb[4].mxu1 %vm298_vm3, %v477_v47 }
 0x4c8   :  { %v3320_v52 = vpop.eup %3319  ;;  %2940 = vmatpush3.msra.mxu1 %v655_v51  ;;  %2941 = vmatprep.mubr.msk.f32.mxu1 %vm3422_vm1, %v3421_v41 }
 0x4c9   :  { %v653_v53 = vmul.f32 %v3320_v52, %v3312_v31  ;;  %2949 = vmatprep.subr.mxu1 %v3421_v41 }
 0x4cb   :  { %2942 = vmatmul.mubr.msk.f32.vlgmr.msra.gmra.mrb[6].mxu1 %vm298_vm3, %v653_v53  ;;  %v1020_v53 = vsub.s32 2, %v3503_v26 }
 0x4cc   :  { %2951 = vmatprep.mubr.msk.f32.mxu1 %vm3422_vm1, %v3421_v41 }
 0x4ef   :  { %v819_v54 = vpop.xlane.xlu1 %818 }
 0x4f0   :  { %3321 = vrcp.f32 %v819_v54  ;;  %v1026_v54 = vsub.s32 3, %v3503_v26 }
 0x4f3   :  { %v823_v55 = vpop.permute.xlu1 %822 }
 0x4f4   :  { %2950 = vmatpush3.msra.mxu1 %v823_v55  ;;  %v1021_v55 = vrot.slane %v3533_v42, %v1020_v53 }
 0x4fa   :  { %v3322_v56 = vpop.eup %3321 }
 0x4fb   :  { %v821_v58 = vmul.f32 %v3322_v56, %v3314_v36 }
 0x4fd   :  { %2952 = vmatmul.mubr.msk.f32.vlgmr.msra.gmra.mrb[8].mxu1 %vm298_vm3, %v821_v58 }
 0x596   :  { %v382_v59 = vpop.f32.mrb[2].mxu1 }
 0x597   :  { %386 = vst.msk [vmem:[#allocation2] sm:$0xff] %vm217_vm2, %v382_v59  ;;  %v2923_v60 = vpop.f32.mrb[3].mxu1  ;;  %v1027_v59 = vrot.slane %v3533_v42, %v1026_v54 }
 0x59a   :  { %v550_v61 = vpop.f32.mrb[4].mxu1 }
 0x59b   :  { %555 = vrot.lane.b32.xlu0 %v550_v61, %s3420_s25  ;;  %v2933_v62 = vpop.f32.mrb[5].mxu1 }
 0x59e   :  { %v726_v63 = vpop.f32.mrb[6].mxu1 }
 0x59f   :  { %730 = vst.msk [vmem:[#allocation2 + $0x8] sm:$0xff] %vm217_vm2, %v726_v63  ;;  %v2943_v0 = vpop.f32.mrb[7].mxu1 }
 0x5d0   :  { %v894_v8 = vpop.f32.mrb[8].mxu1 }
 0x5d1   :  { %899 = vrot.lane.b32.xlu1 %v894_v8, %s3420_s25  ;;  %v2953_v9 = vpop.f32.mrb[9].mxu1  ;;  %v3162_v8 = vpack.c.bf16 %v117_v7, %v116_v6 }
 0x5d2   :  { %v118_v9 = vld [vmem:[#allocation3 + $0x90] sm:$0xff] }
 0x60d   :  { %v556_v10 = vpop.permute.xlu0 %555 }
 0x60e   :  { %559 = vst.msk [vmem:[#allocation2] sm:$0xff] %vm558_vm4, %v556_v10  ;;  %v119_v10 = vld [vmem:[#allocation3 + $0x98] sm:$0xff] }
 0x615   :  { %v903_v11 = vld [vmem:[#allocation2] sm:$0xff] }
 0x616   :  { %2962 = vmatprep.mubr.msk.f32.mxu0 %vm57_vm0, %v903_v11  ;;  %v3166_v11 = vpack.c.bf16 %v119_v10, %v118_v9 }
 0x643   :  { %v900_v12 = vpop.permute.xlu1 %899 }
 0x644   :  { %902 = vst.msk [vmem:[#allocation2 + $0x8] sm:$0xff] %vm558_vm4, %v900_v12  ;;  %v120_v12 = vld [vmem:[#allocation3 + $0xa0] sm:$0xff] }
 0x64b   :  { %v904_v13 = vld [vmem:[#allocation2 + $0x8] sm:$0xff] }
 0x64c   :  { %2963 = vmatmul.mubr.msk.f32.vlgmr.msra.gmra.mrb[8].mxu0 %vm57_vm0, %v904_v13  ;;  %v121_v13 = vld [vmem:[#allocation3 + $0xa8] sm:$0xff] }
 0x71f   :  { %v2964_v15 = vpop.f32.mrb[8].mxu0 }
 0x720   :  { %v987_v16 = vadd.f32 %v2964_v15, %v908_v14  ;;  %v981_v17 = vpop.f32.mrb[9].mxu0  ;;  %v122_v15 = vld [vmem:[#allocation3 + $0xb0] sm:$0xff] }
 0x721   :  { %v982_v18 = vadd.f32 %v981_v17, %v908_v14  ;;  %v3170_v14 = vpack.c.bf16 %v121_v13, %v120_v12 }
 0x722   :  { %v991_v19 = vadd.f32 %v987_v16, %v3520_v40  ;;  %v123_v16 = vld [vmem:[#allocation3 + $0xb8] sm:$0xff] }
 0x723   :  { %v990_v20 = vadd.f32 %v982_v18, %v3516_v38  ;;  %v108_v38 = vld [vmem:[#allocation3 + $0x40] sm:$0xff]  ;;  %v3174_v17 = vpack.c.bf16 %v123_v16, %v122_v15  ;;  %v1255_v16 = vld [vmem:[#allocation3 + $0xf0] sm:$0xff] }
 0x724   :  { %v995_v21 = vsel %vm57_vm0, %v991_v19, 0.0  ;;  %v3146_v36 = vpack.c.bf16 %v109_v35, %v108_v38  ;;  %v124_v18 = vld [vmem:[#allocation3 + $0xc0] sm:$0xff] }
 0x725   :  { %996 = vadd.xlane.f32.xlu1 %v995_v21  ;;  %v992_v22 = vsel %vm57_vm0, %v990_v20, 0.0  ;;  %v126_v21 = vld [vmem:[#allocation3 + $0xd0] sm:$0xff] }
 0x726   :  { %993 = vadd.xlane.f32.xlu0 %v992_v22  ;;  %3147 = vmatprep.subr.bf16.mxu0 %v3146_v36  ;;  %v127_v22 = vld [vmem:[#allocation3 + $0xd8] sm:$0xff] }
 0x727   :  { %3149 = vmatpush3.bf16.msra.mxu0 %v3146_v36 }
 0x728   :  { %3151 = vmatprep.subr.bf16.mxu0 %v3150_v43 }
 0x72b   :  { %3153 = vmatpush3.bf16.msra.mxu0 %v3150_v43 }
 0x72c   :  { %3155 = vmatprep.subr.bf16.mxu0 %v3154_v48 }
 0x7b2   :  { %v997_v23 = vpop.xlane.xlu1 %996 }
 0x7b3   :  { %v999_v24 = vmul.f32 0.03125, %v997_v23  ;;  %v994_v25 = vpop.xlane.xlu0 %993  ;;  %v3182_v23 = vpack.c.bf16 %v127_v22, %v126_v21 }
 0x7b4   :  { %v998_v27 = vmul.f32 0.03125, %v994_v25 }
 0x7b5   :  { %v1001_v29 = vsub.f32 %v991_v19, %v999_v24  ;;  %v125_v19 = vld [vmem:[#allocation3 + $0xc8] sm:$0xff]  ;;  %v1032_v24 = vsub.s32 4, %v3503_v26 }
 0x7b6   :  { %v1000_v31 = vsub.f32 %v990_v20, %v998_v27  ;;  %v3178_v20 = vpack.c.bf16 %v125_v19, %v124_v18 }
 0x7b7   :  { %v1003_v34 = vmul.f32 %v1001_v29, %v1001_v29  ;;  %v1033_v25 = vrot.slane %v3533_v42, %v1032_v24 }
 0x7b8   :  { %v1002_v32 = vmul.f32 %v1000_v31, %v1000_v31 }
 0x7b9   :  { %v1007_v40 = vsel %vm57_vm0, %v1003_v34, 0.0 }
 0x7ba   :  { %v1004_v33 = vsel %vm57_vm0, %v1002_v32, 0.0 }
 0x7bb   :  { %1005 = vadd.xlane.f32.xlu0 %v1004_v33 }
 0x7bf   :  { %1008 = vadd.xlane.f32.xlu0 %v1007_v40 }
 0x848   :  { %v1006_v46 = vpop.xlane.xlu0 %1005 }
 0x849   :  { %v1010_v49 = vmul.f32 0.03125, %v1006_v46 }
 0x84b   :  { %v1012_v50 = vadd.f32 1e-12, %v1010_v49 }
 0x84c   :  { %v1009_v47 = vpop.xlane.xlu0 %1008 }
 0x84d   :  { %3323 = vrsqrt.f32 %v1012_v50  ;;  %v1011_v51 = vmul.f32 0.03125, %v1009_v47 }
 0x84f   :  { %v1013_v52 = vadd.f32 1e-12, %v1011_v51 }
 0x851   :  { %3325 = vrsqrt.f32 %v1013_v52 }
 0x857   :  { %v3324_v56 = vpop.eup %3323 }
 0x858   :  { %v1016_v58 = vmul.f32 %v3324_v56, %v1000_v31 }
 0x85a   :  { %v1022_v60 = vmul.f32 %v1021_v55, %v1016_v58 }
 0x85b   :  { %v3326_v61 = vpop.eup %3325 }
 0x85c   :  { %v1017_v62 = vmul.f32 %v3326_v61, %v1001_v29  ;;  %v3638_v63 = vadd.f32 %v1027_v59, %v1022_v60 }
 0x85e   :  { %v1023_v0 = vmul.f32 %v1021_v55, %v1017_v62  ;;  %2973 = vmatprep.mubr.msk.f32.mxu0 %vm57_vm0, %v3638_v63  ;;  %v1135_v55 = vsub.s32 5, %v3503_v26 }
 0x860   :  { %v3642_v1 = vadd.f32 %v1027_v59, %v1023_v0  ;;  %v1136_v56 = vrot.slane %v3533_v42, %v1135_v55 }
 0x862   :  { %2974 = vmatmul.mubr.msk.f32.vlgmr.msra.gmra.mrb[10].mxu0 %vm57_vm0, %v3642_v1 }
 0x863   :  { %3157 = vmatpush3.bf16.msra.mxu0 %v3154_v48 }
 0x864   :  { %3159 = vmatprep.subr.bf16.mxu0 %v3158_v5 }
 0x867   :  { %3161 = vmatpush3.bf16.msra.mxu0 %v3158_v5 }
 0x868   :  { %3163 = vmatprep.subr.bf16.mxu0 %v3162_v8 }
 0x86b   :  { %3165 = vmatpush3.bf16.msra.mxu0 %v3162_v8 }
 0x86c   :  { %3167 = vmatprep.subr.bf16.mxu0 %v3166_v11 }
 0x86f   :  { %3169 = vmatpush3.bf16.msra.mxu0 %v3166_v11 }
 0x870   :  { %3171 = vmatprep.subr.bf16.mxu0 %v3170_v14 }
 0x873   :  { %3173 = vmatpush3.bf16.msra.mxu0 %v3170_v14  ;;  %v1254_v14 = vld [vmem:[#allocation3 + $0xe8] sm:$0xff] }
 0x874   :  { %3175 = vmatprep.subr.bf16.mxu0 %v3174_v17 }
 0x877   :  { %3177 = vmatpush3.bf16.msra.mxu0 %v3174_v17  ;;  %v1256_v17 = vld [vmem:[#allocation3 + $0xf8] sm:$0xff] }
 0x878   :  { %3179 = vmatprep.subr.bf16.mxu0 %v3178_v20  ;;  %v3190_v18 = vpack.c.bf16 %v1256_v17, %v1255_v16 }
 0x87b   :  { %3181 = vmatpush3.bf16.msra.mxu0 %v3178_v20 }
 0x87c   :  { %3183 = vmatprep.subr.bf16.mxu0 %v3182_v23 }
 0x87f   :  { %3185 = vmatpush3.bf16.msra.mxu0 %v3182_v23 }
 0x880   :  { %3052 = vmatprep.subr.mxu0 %v3421_v41 }
 0x935   :  { %v2975_v27 = vpop.f32.mrb[10].mxu0 }
 0x936   :  { %v1112_v29 = vadd.f32 %v2975_v27, %v1033_v25  ;;  %v1106_v31 = vpop.f32.mrb[11].mxu0  ;;  %v1242_v27 = vsub.s32 6, %v3503_v26 }
 0x937   :  { %v1107_v32 = vadd.f32 %v1106_v31, %v1033_v25 }
 0x938   :  { %v1118_v33 = vmul.f32 0.044715, %v1112_v29  ;;  %v1116_v47 = vmul.f32 0.5, %v1112_v29  ;;  %v1243_v31 = vrot.slane %v3533_v42, %v1242_v27 }
 0x939   :  { %v1117_v34 = vmul.f32 0.044715, %v1107_v32  ;;  %v1115_v49 = vmul.f32 0.5, %v1107_v32 }
 0x93a   :  { %v1120_v40 = vmul.f32 %v1118_v33, %v1112_v29 }
 0x93b   :  { %v1119_v38 = vmul.f32 %v1117_v34, %v1107_v32 }
 0x93c   :  { %v1122_v35 = vmul.f32 %v1120_v40, %v1112_v29 }
 0x93d   :  { %v1121_v36 = vmul.f32 %v1119_v38, %v1107_v32 }
 0x93e   :  { %v1124_v37 = vadd.f32 %v1122_v35, %v1112_v29  ;;  %v1248_v29 = vsub.s32 7, %v3503_v26 }
 0x93f   :  { %v1123_v39 = vadd.f32 %v1121_v36, %v1107_v32 }
 0x940   :  { %v1126_v43 = vmul.f32 0.7978846, %v1124_v37  ;;  %v1249_v38 = vrot.slane %v3533_v42, %v1248_v29 }
 0x941   :  { %v1125_v44 = vmul.f32 0.7978846, %v1123_v39 }
 0x942   :  { %3327 = vtanh.f32 %v1126_v43  ;;  %v3685_v43 = vld [vmem:[%s3824_s4 + $0x8] sm:$0xff] }
 0x943   :  { %3329 = vtanh.f32 %v1125_v44  ;;  %v1286_v42 = vrot.slane %v3685_v43, %v3506_v28 }
 0x94c   :  { %v3328_v45 = vpop.eup %3327 }
 0x94d   :  { %v3330_v48 = vpop.eup %3329  ;;  %v1130_v46 = vadd.f32 1.0, %v3328_v45 }
 0x94e   :  { %v1129_v50 = vadd.f32 1.0, %v3330_v48 }
 0x94f   :  { %v1132_v52 = vmul.f32 %v1130_v46, %v1116_v47 }
 0x950   :  { %v1131_v51 = vmul.f32 %v1129_v50, %v1115_v49 }
 0x952   :  { %3008 = vmatprep.mubr.f32.mxu0 %v1131_v51 }
 0x953   :  { %3009 = vmatmul.mubr.f32.vlgmr.msra.gmra.mrb[12].mxu0 %v1132_v52 }
 0x954   :  { %3054 = vmatprep.mubr.msk.f32.mxu0 %vm3422_vm1, %v3421_v41 }
 0xa26   :  { %v3010_v58 = vpop.f32.mrb[12].mxu0 }
 0xa27   :  { %v1209_v59 = vadd.f32 %v3010_v58, %v1136_v56  ;;  %v1203_v60 = vpop.f32.mrb[13].mxu0 }
 0xa28   :  { %v1204_v61 = vadd.f32 %v1203_v60, %v1136_v56 }
 0xa29   :  { %v1213_v62 = vadd.f32 %v1209_v59, %v3642_v1 }
 0xa2a   :  { %v1212_v0 = vadd.f32 %v1204_v61, %v3638_v63  ;;  %v1253_v63 = vld [vmem:[#allocation3 + $0xe0] sm:$0xff] }
 0xa2b   :  { %v1217_v2 = vsel %vm57_vm0, %v1213_v62, 0.0  ;;  %v3186_v15 = vpack.c.bf16 %v1254_v14, %v1253_v63 }
 0xa2c   :  { %1218 = vadd.xlane.f32.xlu1 %v1217_v2  ;;  %v1214_v3 = vsel %vm57_vm0, %v1212_v0, 0.0 }
 0xa2d   :  { %1215 = vadd.xlane.f32.xlu0 %v1214_v3  ;;  %3187 = vmatprep.subr.bf16.mxu1 %v3186_v15 }
 0xa2e   :  { %3189 = vmatpush3.bf16.msra.mxu1 %v3186_v15 }
 0xa2f   :  { %3191 = vmatprep.subr.bf16.mxu1 %v3190_v18 }
 0xa32   :  { %3193 = vmatpush3.bf16.msra.mxu1 %v3190_v18 }
 0xa33   :  { %3022 = vmatprep.subr.mxu1 %v3421_v41 }
 0xab9   :  { %v1219_v5 = vpop.xlane.xlu1 %1218 }
 0xaba   :  { %v1221_v6 = vmul.f32 0.03125, %v1219_v5  ;;  %v1216_v7 = vpop.xlane.xlu0 %1215 }
 0xabb   :  { %v1220_v8 = vmul.f32 0.03125, %v1216_v7 }
 0xabc   :  { %v1223_v9 = vsub.f32 %v1213_v62, %v1221_v6 }
 0xabd   :  { %v1222_v10 = vsub.f32 %v1212_v0, %v1220_v8 }
 0xabe   :  { %v1225_v11 = vmul.f32 %v1223_v9, %v1223_v9 }
 0xabf   :  { %v1224_v12 = vmul.f32 %v1222_v10, %v1222_v10 }
 0xac0   :  { %v1229_v13 = vsel %vm57_vm0, %v1225_v11, 0.0 }
 0xac1   :  { %1230 = vadd.xlane.f32.xlu1 %v1229_v13  ;;  %v1226_v1 = vsel %vm57_vm0, %v1224_v12, 0.0 }
 0xac2   :  { %1227 = vadd.xlane.f32.xlu0 %v1226_v1 }
 0xb4e   :  { %v1231_v19 = vpop.xlane.xlu1 %1230 }
 0xb4f   :  { %v1233_v20 = vmul.f32 0.03125, %v1231_v19  ;;  %v1228_v21 = vpop.xlane.xlu0 %1227 }
 0xb50   :  { %v1232_v22 = vmul.f32 0.03125, %v1228_v21 }
 0xb51   :  { %v1235_v23 = vadd.f32 1e-12, %v1233_v20 }
 0xb52   :  { %v1234_v25 = vadd.f32 1e-12, %v1232_v22 }
 0xb53   :  { %3331 = vrsqrt.f32 %v1235_v23 }
 0xb54   :  { %3333 = vrsqrt.f32 %v1234_v25 }
 0xb5d   :  { %v3332_v32 = vpop.eup %3331 }
 0xb5e   :  { %v3334_v33 = vpop.eup %3333  ;;  %v1239_v34 = vmul.f32 %v3332_v32, %v1223_v9 }
 0xb5f   :  { %v1238_v40 = vmul.f32 %v3334_v33, %v1222_v10 }
 0xb60   :  { %v1245_v35 = vmul.f32 %v1243_v31, %v1239_v34 }
 0xb61   :  { %v1244_v36 = vmul.f32 %v1243_v31, %v1238_v40 }
 0xb62   :  { %v3674_v39 = vadd.f32 %v1249_v38, %v1245_v35 }
 0xb63   :  { %v3672_v37 = vadd.f32 %v1249_v38, %v1244_v36 }
 0xb65   :  { %3019 = vmatprep.mubr.msk.f32.mxu1 %vm57_vm0, %v3672_v37 }
 0xb66   :  { %3020 = vmatmul.mubr.msk.f32.vlgmr.msra.gmra.mrb[10].mxu1 %vm57_vm0, %v3674_v39 }
 0xb67   :  { %3024 = vmatprep.mubr.msk.f32.mxu1 %vm3422_vm1, %v3421_v41 }
 0xc39   :  { %v3021_v44 = vpop.f32.mrb[10].mxu1 }
 0xc3a   :  { %v3689_v45 = vadd.f32 %v3021_v44, %v1286_v42  ;;  %v1359_v48 = vpop.f32.mrb[11].mxu1 }
 0xc3b   :  { %v1360_v46 = vadd.f32 %v1359_v48, %v1286_v42 }
 0xc3d   :  { %1369 = vrot.lane.b32.xlu0 %v1360_v46, %s3424_s11 }
 0xc41   :  { %1537 = vrot.lane.b32.xlu0 %v1360_v46, %s3423_s10 }
 0xcaf   :  { %v1370_v49 = vpop.permute.xlu0 %1369 }
 0xcb0   :  { %3023 = vmatpush3.xpose.msk.msra.mxu1 %vm217_vm2, %v1370_v49 }
 0xcb1   :  { %3027 = vmatprep.subr.mxu1 %v3421_v41 }
 0xcb3   :  { %3025 = vmatmul.mubr.msk.f32.vlgmr.msra.gmra.mrb[12].mxu1 %vm217_vm2, %v1360_v46  ;;  %v1538_v6 = vpop.permute.xlu0 %1537 }
 0xcb4   :  { %3029 = vmatprep.mubr.msk.f32.mxu1 %vm3422_vm1, %v3421_v41 }
 0xd86   :  { %v1441_v50 = vpop.f32.mrb[12].mxu1 }
 0xd87   :  { %v1445_v47 = vmul.f32 0.25, %v1441_v50  ;;  %v3026_v51 = vpop.f32.mrb[13].mxu1 }
 0xd89   :  { %v1446_v52 = vadd.f32 %v1445_v47, %v3576_v57 }
 0xd8b   :  { %v1447_v56 = vsel %vm298_vm3, %v1446_v52, -inf }
 0xd8c   :  { %1448 = vmax.xlane.f32.xlu1 %v1447_v56 }
 0xd9d   :  { %1458 = vrot.lane.b32.xlu1 %v1360_v46, %s3427_s15 }
 0xe19   :  { %v1449_v58 = vpop.xlane.xlu1 %1448 }
 0xe1a   :  { %v1450_v59 = vsub.f32 %v1446_v52, %v1449_v58 }
 0xe1c   :  { %v1451_v60 = vmul.f32 1.442695, %v1450_v59 }
 0xe1d   :  { %v1459_v61 = vpop.permute.xlu1 %1458 }
 0xe1e   :  { %3335 = vpow2.f32 %v1451_v60  ;;  %3028 = vmatpush3.msra.mxu1 %v1459_v61 }
 0xe1f   :  { %3032 = vmatprep.subr.mxu1 %v3421_v41 }
 0xe28   :  { %v3336_v62 = vpop.eup %3335 }
 0xe29   :  { %v1453_v0 = vsel %vm298_vm3, %v3336_v62, 0.0 }
 0xe2a   :  { %1454 = vadd.xlane.f32.xlu1 %v1453_v0 }
 0xe3b   :  { %1535 = vrot.lane.b32.xlu1 %v1360_v46, %s3425_s12 }
 0xe3f   :  { %1708 = vrot.lane.b32.xlu1 %v3689_v45, %s3424_s11 }
 0xeb7   :  { %v1455_v2 = vpop.xlane.xlu1 %1454 }
 0xeb8   :  { %3337 = vrcp.f32 %v1455_v2 }
 0xebb   :  { %v1536_v7 = vpop.permute.xlu1 %1535 }
 0xebf   :  { %v1709_v19 = vpop.permute.xlu1 %1708 }
 0xec2   :  { %v3338_v3 = vpop.eup %3337 }
 0xec3   :  { %v1457_v5 = vmul.f32 %v3338_v3, %v3336_v62 }
 0xec5   :  { %3030 = vmatmul.mubr.msk.f32.vlgmr.msra.gmra.mrb[14].mxu1 %vm298_vm3, %v1457_v5 }
 0xec6   :  { %3033 = vmatpush3.xpose.msk.msra.mxu1 %vm217_vm2, %v1538_v6  ;;  %3034 = vmatprep.mubr.msk.f32.mxu1 %vm3422_vm1, %v3421_v41 }
 0xec7   :  { %3037 = vmatprep.subr.mxu1 %v3421_v41 }
 0xec9   :  { %3035 = vmatmul.mubr.msk.f32.vlgmr.msra.gmra.mrb[16].mxu1 %vm217_vm2, %v1536_v7 }
 0xeca   :  { %3039 = vmatprep.mubr.msk.f32.mxu1 %vm3422_vm1, %v3421_v41 }
 0xf98   :  { %v1530_v8 = vpop.f32.mrb[14].mxu1 }
 0xf99   :  { %1534 = vst.msk [vmem:[#allocation2] sm:$0xff] %vm217_vm2, %v1530_v8  ;;  %v3031_v9 = vpop.f32.mrb[15].mxu1 }
 0xf9a   :  { %v1258_v9 = vld [vmem:[#allocation3 + $0x108] sm:$0xff] }
 0xf9c   :  { %v1609_v10 = vpop.f32.mrb[16].mxu1 }
 0xf9d   :  { %v1613_v11 = vmul.f32 0.25, %v1609_v10  ;;  %v3036_v12 = vpop.f32.mrb[17].mxu1 }
 0xf9e   :  { %v1260_v12 = vld [vmem:[#allocation3 + $0x118] sm:$0xff] }
 0xf9f   :  { %v1614_v13 = vadd.f32 %v1613_v11, %v3576_v57  ;;  %v1259_v11 = vld [vmem:[#allocation3 + $0x110] sm:$0xff] }
 0xfa1   :  { %v1615_v1 = vsel %vm298_vm3, %v1614_v13, -inf }
 0xfa2   :  { %1616 = vmax.xlane.f32.xlu0 %v1615_v1 }
 0xfb8   :  { %1626 = vrot.lane.b32.xlu0 %v1360_v46, %s3426_s1 }
 0xfbc   :  { %1876 = vrot.lane.b32.xlu0 %v3689_v45, %s3423_s10 }
0x102f   :  { %v1617_v63 = vpop.xlane.xlu0 %1616 }
0x1030   :  { %v1618_v14 = vsub.f32 %v1614_v13, %v1617_v63  ;;  %v3198_v13 = vpack.c.bf16 %v1260_v12, %v1259_v11  ;;  %v1268_v11 = vld [vmem:[#allocation3 + $0x158] sm:$0xff] }
0x1032   :  { %v1619_v15 = vmul.f32 1.442695, %v1618_v14 }
0x1033   :  { %v1627_v16 = vpop.permute.xlu0 %1626 }
0x1034   :  { %3339 = vpow2.f32 %v1619_v15  ;;  %3038 = vmatpush3.msra.mxu1 %v1627_v16 }
0x1035   :  { %3042 = vmatprep.subr.mxu1 %v3421_v41 }
0x1037   :  { %v1877_v17 = vpop.permute.xlu0 %1876 }
0x1038   :  { %3053 = vmatpush3.xpose.msk.msra.mxu0 %vm217_vm2, %v1877_v17 }
0x103e   :  { %v3340_v57 = vpop.eup %3339 }
0x103f   :  { %v1621_v18 = vsel %vm298_vm3, %v3340_v57, 0.0 }
0x1040   :  { %1622 = vadd.xlane.f32.xlu1 %v1621_v18 }
0x1051   :  { %1874 = vrot.lane.b32.xlu1 %v3689_v45, %s3425_s12 }
0x10cd   :  { %v1623_v20 = vpop.xlane.xlu1 %1622 }
0x10ce   :  { %3341 = vrcp.f32 %v1623_v20 }
0x10d1   :  { %v1875_v21 = vpop.permute.xlu1 %1874 }
0x10d2   :  { %3055 = vmatmul.mubr.msk.f32.vlgmr.msra.gmra.mrb[14].mxu0 %vm217_vm2, %v1875_v21 }
0x10d8   :  { %v3342_v22 = vpop.eup %3341 }
0x10d9   :  { %v1625_v23 = vmul.f32 %v3342_v22, %v3340_v57  ;;  %v2051_v57 = vrot.slane %v3685_v43, %v3512_v30 }
0x10db   :  { %3040 = vmatmul.mubr.msk.f32.vlgmr.msra.gmra.mrb[18].mxu1 %vm298_vm3, %v1625_v23 }
0x10dc   :  { %3043 = vmatpush3.xpose.msk.msra.mxu1 %vm217_vm2, %v1709_v19  ;;  %3044 = vmatprep.mubr.msk.f32.mxu1 %vm3422_vm1, %v3421_v41 }
0x10dd   :  { %3047 = vmatprep.subr.mxu1 %v3421_v41 }
0x10df   :  { %3045 = vmatmul.mubr.msk.f32.vlgmr.msra.gmra.mrb[20].mxu1 %vm217_vm2, %v3689_v45 }
0x10e0   :  { %3049 = vmatprep.mubr.msk.f32.mxu1 %vm3422_vm1, %v3421_v41 }
0x11a5   :  { %v1948_v25 = vpop.f32.mrb[14].mxu0 }
0x11a6   :  { %v1952_v31 = vmul.f32 0.25, %v1948_v25  ;;  %v3056_v32 = vpop.f32.mrb[15].mxu0 }
0x11a8   :  { %v1953_v33 = vadd.f32 %v1952_v31, %v3583_v4 }
0x11aa   :  { %v1954_v34 = vsel %vm298_vm3, %v1953_v33, -inf }
0x11ab   :  { %1955 = vmax.xlane.f32.xlu1 %v1954_v34 }
0x11ae   :  { %v1698_v40 = vpop.f32.mrb[18].mxu1 }
0x11af   :  { %v3041_v38 = vpop.f32.mrb[19].mxu1 }
0x11b2   :  { %v1780_v35 = vpop.f32.mrb[20].mxu1 }
0x11b3   :  { %v1784_v36 = vmul.f32 0.25, %v1780_v35  ;;  %v3046_v42 = vpop.f32.mrb[21].mxu1 }
0x11b5   :  { %v1785_v44 = vadd.f32 %v1784_v36, %v3583_v4 }
0x11b7   :  { %v1786_v48 = vsel %vm298_vm3, %v1785_v44, -inf }
0x11b8   :  { %1787 = vmax.xlane.f32.xlu0 %v1786_v48  ;;  %v1262_v48 = vld [vmem:[#allocation3 + $0x128] sm:$0xff] }
0x11bc   :  { %1965 = vrot.lane.b32.xlu1 %v3689_v45, %s3426_s1 }
0x11c0   :  { %1703 = vrot.lane.b32.xlu1 %v1698_v40, %s3420_s25 }
0x1238   :  { %v1956_v46 = vpop.xlane.xlu1 %1955 }
0x1239   :  { %v1957_v49 = vsub.f32 %v1953_v33, %v1956_v46 }
0x123b   :  { %v1958_v50 = vmul.f32 1.442695, %v1957_v49  ;;  %v1263_v49 = vld [vmem:[#allocation3 + $0x130] sm:$0xff] }
0x123c   :  { %v1966_v47 = vpop.permute.xlu1 %1965 }
0x123d   :  { %3343 = vpow2.f32 %v1958_v50  ;;  %v1264_v50 = vld [vmem:[#allocation3 + $0x138] sm:$0xff] }
0x1240   :  { %v1704_v51 = vpop.permute.xlu1 %1703 }
0x1241   :  { %1706 = vst.msk [vmem:[#allocation2] sm:$0xff] %vm558_vm4, %v1704_v51  ;;  %v1265_v51 = vld [vmem:[#allocation3 + $0x140] sm:$0xff] }
0x1245   :  { %v1788_v52 = vpop.xlane.xlu0 %1787 }
0x1246   :  { %v1789_v56 = vsub.f32 %v1785_v44, %v1788_v52  ;;  %v1266_v52 = vld [vmem:[#allocation3 + $0x148] sm:$0xff] }
0x1247   :  { %v3344_v58 = vpop.eup %3343 }
0x1248   :  { %v1790_v4 = vmul.f32 1.442695, %v1789_v56  ;;  %v2046_v59 = vld [vmem:[#allocation2] sm:$0xff]  ;;  %v1960_v60 = vsel %vm298_vm3, %v3344_v58, 0.0  ;;  %v3210_v56 = vpack.c.bf16 %v1266_v52, %v1265_v51 }
0x1249   :  { %3070 = vmatprep.mubr.msk.f32.mxu0 %vm57_vm0, %v2046_v59  ;;  %1961 = vadd.xlane.f32.xlu0 %v1960_v60 }
0x124a   :  { %3345 = vpow2.f32 %v1790_v4 }
0x1254   :  { %v3346_v61 = vpop.eup %3345 }
0x1255   :  { %v1792_v62 = vsel %vm298_vm3, %v3346_v61, 0.0 }
0x1256   :  { %1793 = vadd.xlane.f32.xlu0 %v1792_v62 }
0x126c   :  { %1797 = vrot.lane.b32.xlu0 %v3689_v45, %s3427_s15  ;;  %v1257_v45 = vld [vmem:[#allocation3 + $0x100] sm:$0xff] }
0x126d   :  { %v3194_v10 = vpack.c.bf16 %v1258_v9, %v1257_v45 }
0x126f   :  { %3195 = vmatprep.subr.bf16.mxu0 %v3194_v10 }
0x1270   :  { %3197 = vmatpush3.bf16.msra.mxu0 %v3194_v10 }
0x1271   :  { %3199 = vmatprep.subr.bf16.mxu0 %v3198_v13 }
0x1274   :  { %3201 = vmatpush3.bf16.msra.mxu0 %v3198_v13  ;;  %v1270_v13 = vld [vmem:[#allocation3 + $0x168] sm:$0xff] }
0x1275   :  { %3211 = vmatprep.subr.bf16.mxu0 %v3210_v56 }
0x12d6   :  { %v1962_v0 = vpop.xlane.xlu0 %1961 }
0x12e3   :  { %v1794_v2 = vpop.xlane.xlu0 %1793 }
0x12e4   :  { %3347 = vrcp.f32 %v1794_v2 }
0x12e5   :  { %3349 = vrcp.f32 %v1962_v0  ;;  %v2164_v0 = vrot.slane %v3685_v43, %v1020_v53  ;;  %v1267_v53 = vld [vmem:[#allocation3 + $0x150] sm:$0xff] }
0x12e6   :  { %v3214_v12 = vpack.c.bf16 %v1268_v11, %v1267_v53 }
0x12e7   :  { %v1798_v3 = vpop.permute.xlu0 %1797 }
0x12e8   :  { %3048 = vmatpush3.msra.mxu1 %v1798_v3 }
0x12e9   :  { %3057 = vmatprep.subr.mxu1 %v3421_v41 }
0x12ee   :  { %v3348_v5 = vpop.eup %3347 }
0x12ef   :  { %v1796_v6 = vmul.f32 %v3348_v5, %v3346_v61  ;;  %v3350_v7 = vpop.eup %3349  ;;  %v2170_v5 = vrot.slane %v3685_v43, %v1026_v54  ;;  %v1269_v54 = vld [vmem:[#allocation3 + $0x160] sm:$0xff] }
0x12f0   :  { %v1964_v8 = vmul.f32 %v3350_v7, %v3344_v58 }
0x12f1   :  { %3050 = vmatmul.mubr.msk.f32.vlgmr.msra.gmra.mrb[22].mxu1 %vm298_vm3, %v1796_v6 }
0x12f2   :  { %3058 = vmatpush3.msra.mxu1 %v1966_v47  ;;  %3059 = vmatprep.mubr.msk.f32.mxu1 %vm3422_vm1, %v3421_v41  ;;  %v3206_v47 = vpack.c.bf16 %v1264_v50, %v1263_v49 }
0x12f5   :  { %3060 = vmatmul.mubr.msk.f32.vlgmr.msra.gmra.mrb[24].mxu1 %vm298_vm3, %v1964_v8 }
0x13c4   :  { %v1869_v1 = vpop.f32.mrb[22].mxu1 }
0x13c5   :  { %1873 = vst.msk [vmem:[#allocation2 + $0x8] sm:$0xff] %vm217_vm2, %v1869_v1  ;;  %v3051_v63 = vpop.f32.mrb[23].mxu1  ;;  %v3218_v1 = vpack.c.bf16 %v1270_v13, %v1269_v54 }
0x13c6   :  { %v1271_v63 = vld [vmem:[#allocation3 + $0x170] sm:$0xff] }
0x13c8   :  { %v2037_v14 = vpop.f32.mrb[24].mxu1 }
0x13c9   :  { %2042 = vrot.lane.b32.xlu1 %v2037_v14, %s3420_s25  ;;  %v3061_v15 = vpop.f32.mrb[25].mxu1  ;;  %v1272_v14 = vld [vmem:[#allocation3 + $0x178] sm:$0xff] }
0x13ca   :  { %v3222_v15 = vpack.c.bf16 %v1272_v14, %v1271_v63  ;;  %v2396_v14 = vld [vmem:[#allocation5 + $0x10] sm:$0xff] }
0x143b   :  { %v2043_v16 = vpop.permute.xlu1 %2042 }
0x143c   :  { %2045 = vst.msk [vmem:[#allocation2 + $0x8] sm:$0xff] %vm558_vm4, %v2043_v16  ;;  %v1273_v16 = vld [vmem:[#allocation3 + $0x180] sm:$0xff] }
0x1443   :  { %v2047_v17 = vld [vmem:[#allocation2 + $0x8] sm:$0xff] }
0x1444   :  { %3071 = vmatmul.mubr.msk.f32.vlgmr.msra.gmra.mrb[16].mxu0 %vm57_vm0, %v2047_v17  ;;  %v1274_v17 = vld [vmem:[#allocation3 + $0x188] sm:$0xff] }
0x1445   :  { %3213 = vmatpush3.bf16.msra.mxu0 %v3210_v56 }
0x1446   :  { %3215 = vmatprep.subr.bf16.mxu0 %v3214_v12 }
0x1449   :  { %3217 = vmatpush3.bf16.msra.mxu0 %v3214_v12 }
0x144a   :  { %3219 = vmatprep.subr.bf16.mxu0 %v3218_v1 }
0x144d   :  { %3221 = vmatpush3.bf16.msra.mxu0 %v3218_v1 }
0x144e   :  { %3223 = vmatprep.subr.bf16.mxu0 %v3222_v15 }
0x1451   :  { %3225 = vmatpush3.bf16.msra.mxu0 %v3222_v15 }
0x1517   :  { %v3072_v18 = vpop.f32.mrb[16].mxu0 }
0x1518   :  { %v2130_v19 = vadd.f32 %v3072_v18, %v2051_v57  ;;  %v2124_v20 = vpop.f32.mrb[17].mxu0  ;;  %v1275_v18 = vld [vmem:[#allocation3 + $0x190] sm:$0xff] }
0x1519   :  { %v2125_v21 = vadd.f32 %v2124_v20, %v2051_v57  ;;  %v3226_v57 = vpack.c.bf16 %v1274_v17, %v1273_v16  ;;  %v2397_v16 = vld [vmem:[#allocation5 + $0x20] sm:$0xff]  ;;  %v2398_v17 = vld [vmem:[#allocation5 + $0x30] sm:$0xff] }
0x151a   :  { %v2134_v22 = vadd.f32 %v2130_v19, %v3674_v39  ;;  %v1276_v19 = vld [vmem:[#allocation3 + $0x198] sm:$0xff] }
0x151b   :  { %v2133_v23 = vadd.f32 %v2125_v21, %v3672_v37  ;;  %v1261_v37 = vld [vmem:[#allocation3 + $0x120] sm:$0xff]  ;;  %3227 = vmatprep.subr.bf16.mxu0 %v3226_v57  ;;  %v3230_v20 = vpack.c.bf16 %v1276_v19, %v1275_v18 }
0x151c   :  { %v2138_v25 = vsel %vm57_vm0, %v2134_v22, 0.0  ;;  %v3202_v46 = vpack.c.bf16 %v1262_v48, %v1261_v37  ;;  %v1277_v21 = vld [vmem:[#allocation3 + $0x1a0] sm:$0xff]  ;;  %3229 = vmatpush3.bf16.msra.mxu0 %v3226_v57  ;;  %v3246_v57 = vpack.c.bf16 %v2398_v17, %v2397_v16  ;;  %v2432_v17 = vld [vmem:[#allocation5 + $0x210] sm:$0xff] }
0x151d   :  { %2139 = vadd.xlane.f32.xlu1 %v2138_v25  ;;  %v2135_v31 = vsel %vm57_vm0, %v2133_v23, 0.0  ;;  %3231 = vmatprep.subr.bf16.mxu0 %v3230_v20  ;;  %v1279_v25 = vld [vmem:[#allocation3 + $0x1b0] sm:$0xff]  ;;  %v2431_v16 = vld [vmem:[#allocation5 + $0x200] sm:$0xff] }
0x151e   :  { %2136 = vadd.xlane.f32.xlu0 %v2135_v31  ;;  %3203 = vmatprep.subr.bf16.mxu1 %v3202_v46  ;;  %v1280_v31 = vld [vmem:[#allocation3 + $0x1b8] sm:$0xff] }
0x151f   :  { %3205 = vmatpush3.bf16.msra.mxu1 %v3202_v46 }
0x1520   :  { %3207 = vmatprep.subr.bf16.mxu1 %v3206_v47  ;;  %3233 = vmatpush3.bf16.msra.mxu0 %v3230_v20 }
0x1523   :  { %3209 = vmatpush3.bf16.msra.mxu1 %v3206_v47 }
0x15aa   :  { %v2140_v32 = vpop.xlane.xlu1 %2139 }
0x15ab   :  { %v2142_v33 = vmul.f32 0.03125, %v2140_v32  ;;  %v2137_v34 = vpop.xlane.xlu0 %2136  ;;  %v3238_v32 = vpack.c.bf16 %v1280_v31, %v1279_v25  ;;  %v2386_v25 = vrot.slane %v3685_v43, %v1242_v27  ;;  %v2402_v27 = vld [vmem:[#allocation5 + $0x58] sm:$0xff] }
0x15ac   :  { %v2141_v40 = vmul.f32 0.03125, %v2137_v34 }
0x15ad   :  { %v2144_v38 = vsub.f32 %v2134_v22, %v2142_v33  ;;  %v1278_v22 = vld [vmem:[#allocation3 + $0x1a8] sm:$0xff]  ;;  %v2176_v33 = vrot.slane %v3685_v43, %v1032_v24 }
0x15ae   :  { %v2143_v35 = vsub.f32 %v2133_v23, %v2141_v40  ;;  %v3234_v23 = vpack.c.bf16 %v1278_v22, %v1277_v21 }
0x15af   :  { %v2146_v44 = vmul.f32 %v2144_v38, %v2144_v38 }
0x15b0   :  { %v2145_v36 = vmul.f32 %v2143_v35, %v2143_v35  ;;  %3235 = vmatprep.subr.bf16.mxu0 %v3234_v23 }
0x15b1   :  { %v2150_v39 = vsel %vm57_vm0, %v2146_v44, 0.0  ;;  %3237 = vmatpush3.bf16.msra.mxu0 %v3234_v23 }
0x15b2   :  { %v2147_v42 = vsel %vm57_vm0, %v2145_v36, 0.0  ;;  %3239 = vmatprep.subr.bf16.mxu0 %v3238_v32 }
0x15b3   :  { %2148 = vadd.xlane.f32.xlu0 %v2147_v42 }
0x15b5   :  { %3241 = vmatpush3.bf16.msra.mxu0 %v3238_v32 }
0x15b7   :  { %2151 = vadd.xlane.f32.xlu0 %v2150_v39 }
0x1640   :  { %v2149_v58 = vpop.xlane.xlu0 %2148 }
0x1641   :  { %v2153_v4 = vmul.f32 0.03125, %v2149_v58 }
0x1643   :  { %v2155_v59 = vadd.f32 1e-12, %v2153_v4 }
0x1644   :  { %v2152_v60 = vpop.xlane.xlu0 %2151 }
0x1645   :  { %3351 = vrsqrt.f32 %v2155_v59  ;;  %v2154_v61 = vmul.f32 0.03125, %v2152_v60 }
0x1647   :  { %v2156_v62 = vadd.f32 1e-12, %v2154_v61  ;;  %v2279_v61 = vrot.slane %v3685_v43, %v1135_v55 }
0x1649   :  { %3353 = vrsqrt.f32 %v2156_v62 }
0x164f   :  { %v3352_v2 = vpop.eup %3351 }
0x1650   :  { %v2159_v3 = vmul.f32 %v3352_v2, %v2143_v35 }
0x1652   :  { %v2165_v6 = vmul.f32 %v2164_v0, %v2159_v3 }
0x1653   :  { %v3354_v7 = vpop.eup %3353 }
0x1654   :  { %v2160_v8 = vmul.f32 %v3354_v7, %v2144_v38  ;;  %v3771_v45 = vadd.f32 %v2170_v5, %v2165_v6 }
0x1656   :  { %v2166_v9 = vmul.f32 %v2164_v0, %v2160_v8  ;;  %3081 = vmatprep.mubr.msk.f32.mxu1 %vm57_vm0, %v3771_v45 }
0x1658   :  { %v3775_v10 = vadd.f32 %v2170_v5, %v2166_v9 }
0x165a   :  { %3082 = vmatmul.mubr.msk.f32.vlgmr.msra.gmra.mrb[26].mxu1 %vm57_vm0, %v3775_v10 }
0x172d   :  { %v3083_v34 = vpop.f32.mrb[26].mxu1 }
0x172e   :  { %v2255_v40 = vadd.f32 %v3083_v34, %v2176_v33  ;;  %v2249_v38 = vpop.f32.mrb[27].mxu1 }
0x172f   :  { %v2250_v35 = vadd.f32 %v2249_v38, %v2176_v33 }
0x1730   :  { %v2261_v36 = vmul.f32 0.044715, %v2255_v40  ;;  %v2259_v4 = vmul.f32 0.5, %v2255_v40 }
0x1731   :  { %v2260_v42 = vmul.f32 0.044715, %v2250_v35  ;;  %v2258_v24 = vmul.f32 0.5, %v2250_v35 }
0x1732   :  { %v2263_v44 = vmul.f32 %v2261_v36, %v2255_v40 }
0x1733   :  { %v2262_v39 = vmul.f32 %v2260_v42, %v2250_v35 }
0x1734   :  { %v2265_v37 = vmul.f32 %v2263_v44, %v2255_v40  ;;  %v2400_v44 = vld [vmem:[#allocation5 + $0x48] sm:$0xff] }
0x1735   :  { %v2264_v48 = vmul.f32 %v2262_v39, %v2250_v35  ;;  %v2399_v39 = vld [vmem:[#allocation5 + $0x40] sm:$0xff] }
0x1736   :  { %v2267_v46 = vadd.f32 %v2265_v37, %v2255_v40  ;;  %v2392_v40 = vrot.slane %v3685_v43, %v1248_v29  ;;  %v3250_v37 = vpack.c.bf16 %v2402_v27, %v2400_v44  ;;  %v2403_v29 = vld [vmem:[#allocation5 + $0x60] sm:$0xff]  ;;  %v2405_v43 = vld [vmem:[#allocation5 + $0x70] sm:$0xff] }
0x1737   :  { %v2266_v49 = vadd.f32 %v2264_v48, %v2250_v35  ;;  %v2401_v48 = vld [vmem:[#allocation5 + $0x50] sm:$0xff] }
0x1738   :  { %v2269_v50 = vmul.f32 0.7978846, %v2267_v46  ;;  %v2404_v46 = vld [vmem:[#allocation5 + $0x68] sm:$0xff]  ;;  %v3252_v26 = vpack.c.bf16 %v2401_v48, %v2399_v39  ;;  %v2438_v44 = vld [vmem:[#allocation5 + $0x270] sm:$0xff]  ;;  %v2421_v39 = vld [vmem:[#allocation5 + $0x160] sm:$0xff] }
0x1739   :  { %v2268_v47 = vmul.f32 0.7978846, %v2266_v49  ;;  %v2406_v49 = vld [vmem:[#allocation5 + $0x78] sm:$0xff] }
0x173a   :  { %3355 = vtanh.f32 %v2269_v50  ;;  %v3254_v50 = vpack.c.bf16 %v2406_v49, %v2404_v46  ;;  %v2748_v46 = vld [vmem:[%s3826_s6 + $0x1] ss:$4 sm:$0x3] }
0x173b   :  { %3357 = vtanh.f32 %v2268_v47  ;;  %v3256_v47 = vpack.c.bf16 %v2405_v43, %v2403_v29  ;;  %v2538_v49 = vrot.slane %v2748_v46, %v3512_v30 }
0x1744   :  { %v3356_v51 = vpop.eup %3355 }
0x1745   :  { %v3358_v52 = vpop.eup %3357  ;;  %v2273_v56 = vadd.f32 1.0, %v3356_v51  ;;  %v2423_v51 = vld [vmem:[#allocation5 + $0x180] sm:$0xff] }
0x1746   :  { %v2272_v58 = vadd.f32 1.0, %v3358_v52  ;;  %v2424_v52 = vld [vmem:[#allocation5 + $0x190] sm:$0xff] }
0x1747   :  { %v2275_v60 = vmul.f32 %v2273_v56, %v2259_v4  ;;  %v3258_v56 = vpack.c.bf16 %v2424_v52, %v2423_v51 }
0x1748   :  { %v2274_v59 = vmul.f32 %v2272_v58, %v2258_v24  ;;  %v2749_v24 = vld [vmem:[%s3826_s6] ss:$0 sm:$0xff] }
0x174a   :  { %3116 = vmatprep.mubr.f32.mxu0 %v2274_v59 }
0x174b   :  { %3117 = vmatmul.mubr.f32.vlgmr.msra.gmra.mrb[18].mxu0 %v2275_v60 }
0x181e   :  { %v3118_v62 = vpop.f32.mrb[18].mxu0 }
0x181f   :  { %v2352_v0 = vadd.f32 %v3118_v62, %v2279_v61  ;;  %v2346_v2 = vpop.f32.mrb[19].mxu0  ;;  %v2408_v62 = vld [vmem:[#allocation5 + $0x90] sm:$0xff] }
0x1820   :  { %v2347_v3 = vadd.f32 %v2346_v2, %v2279_v61  ;;  %v2407_v61 = vld [vmem:[#allocation5 + $0x80] sm:$0xff]  ;;  %v2426_v2 = vld [vmem:[#allocation5 + $0x1b0] sm:$0xff] }
0x1821   :  { %v2356_v5 = vadd.f32 %v2352_v0, %v3775_v10  ;;  %v2425_v0 = vld [vmem:[#allocation5 + $0x1a0] sm:$0xff] }
0x1822   :  { %v2355_v6 = vadd.f32 %v2347_v3, %v3771_v45  ;;  %v2395_v45 = vld [vmem:[#allocation5] sm:$0xff]  ;;  %v3260_v3 = vpack.c.bf16 %v2408_v62, %v2407_v61 }
0x1823   :  { %v2360_v7 = vsel %vm57_vm0, %v2356_v5, 0.0  ;;  %v3242_v15 = vpack.c.bf16 %v2396_v14, %v2395_v45  ;;  %v2413_v14 = vld [vmem:[#allocation5 + $0xe0] sm:$0xff] }
0x1824   :  { %2361 = vadd.xlane.f32.xlu1 %v2360_v7  ;;  %v2357_v8 = vsel %vm57_vm0, %v2355_v6, 0.0  ;;  %v2410_v7 = vld [vmem:[#allocation5 + $0xb0] sm:$0xff] }
0x1825   :  { %2358 = vadd.xlane.f32.xlu0 %v2357_v8  ;;  %3243 = vmatprep.subr.bf16.mxu1 %v3242_v15 }
0x1826   :  { %3245 = vmatpush3.bf16.msra.mxu1 %v3242_v15  ;;  %v2414_v15 = vld [vmem:[#allocation5 + $0xf0] sm:$0xff] }
0x1827   :  { %3247 = vmatprep.subr.bf16.mxu1 %v3246_v57 }
0x182a   :  { %3249 = vmatpush3.bf16.msra.mxu1 %v3246_v57  ;;  %v3274_v57 = vpack.c.bf16 %v2432_v17, %v2431_v16 }
0x182b   :  { %3251 = vmatprep.subr.bf16.mxu1 %v3250_v37  ;;  %v2422_v37 = vld [vmem:[#allocation5 + $0x170] sm:$0xff] }
0x182c   :  { %v3288_v48 = vpack.c.bf16 %v2422_v37, %v2421_v39 }
0x18b1   :  { %v2362_v9 = vpop.xlane.xlu1 %2361 }
0x18b2   :  { %v2364_v53 = vmul.f32 0.03125, %v2362_v9  ;;  %v2359_v11 = vpop.xlane.xlu0 %2358  ;;  %v2427_v9 = vld [vmem:[#allocation5 + $0x1c0] sm:$0xff] }
0x18b3   :  { %v2363_v12 = vmul.f32 0.03125, %v2359_v11 }
0x18b4   :  { %v2366_v54 = vsub.f32 %v2356_v5, %v2364_v53  ;;  %v3262_v5 = vpack.c.bf16 %v2426_v2, %v2425_v0  ;;  %v2428_v53 = vld [vmem:[#allocation5 + $0x1d0] sm:$0xff] }
0x18b5   :  { %v2365_v55 = vsub.f32 %v2355_v6, %v2363_v12  ;;  %v2409_v6 = vld [vmem:[#allocation5 + $0xa0] sm:$0xff]  ;;  %v3266_v12 = vpack.c.bf16 %v2428_v53, %v2427_v9 }
0x18b6   :  { %v2368_v13 = vmul.f32 %v2366_v54, %v2366_v54  ;;  %v3264_v11 = vpack.c.bf16 %v2410_v7, %v2409_v6 }
0x18b7   :  { %v2367_v1 = vmul.f32 %v2365_v55, %v2365_v55 }
0x18b8   :  { %v2372_v63 = vsel %vm57_vm0, %v2368_v13, 0.0 }
0x18b9   :  { %2373 = vadd.xlane.f32.xlu1 %v2372_v63  ;;  %v2369_v10 = vsel %vm57_vm0, %v2367_v1, 0.0  ;;  %v2429_v1 = vld [vmem:[#allocation5 + $0x1e0] sm:$0xff]  ;;  %v2430_v63 = vld [vmem:[#allocation5 + $0x1f0] sm:$0xff] }
0x18ba   :  { %2370 = vadd.xlane.f32.xlu0 %v2369_v10  ;;  %v3270_v45 = vpack.c.bf16 %v2430_v63, %v2429_v1 }
0x1946   :  { %v2374_v18 = vpop.xlane.xlu1 %2373 }
0x1947   :  { %v2376_v19 = vmul.f32 0.03125, %v2374_v18  ;;  %v2371_v20 = vpop.xlane.xlu0 %2370  ;;  %v2415_v18 = vld [vmem:[#allocation5 + $0x100] sm:$0xff] }
0x1948   :  { %v2375_v21 = vmul.f32 0.03125, %v2371_v20  ;;  %v2433_v20 = vld [vmem:[#allocation5 + $0x220] sm:$0xff] }
0x1949   :  { %v2378_v22 = vadd.f32 1e-12, %v2376_v19  ;;  %v2416_v19 = vld [vmem:[#allocation5 + $0x110] sm:$0xff] }
0x194a   :  { %v2377_v23 = vadd.f32 1e-12, %v2375_v21  ;;  %v2434_v21 = vld [vmem:[#allocation5 + $0x230] sm:$0xff] }
0x194b   :  { %3359 = vrsqrt.f32 %v2378_v22  ;;  %v3276_v22 = vpack.c.bf16 %v2416_v19, %v2415_v18 }
0x194c   :  { %3361 = vrsqrt.f32 %v2377_v23  ;;  %v3278_v23 = vpack.c.bf16 %v2434_v21, %v2433_v20 }
0x1955   :  { %v3360_v31 = vpop.eup %3359 }
0x1956   :  { %v3362_v32 = vpop.eup %3361  ;;  %v2382_v33 = vmul.f32 %v3360_v31, %v2366_v54  ;;  %v2411_v54 = vld [vmem:[#allocation5 + $0xc0] sm:$0xff]  ;;  %v2418_v31 = vld [vmem:[#allocation5 + $0x130] sm:$0xff] }
0x1957   :  { %v2381_v34 = vmul.f32 %v3362_v32, %v2365_v55  ;;  %v2412_v55 = vld [vmem:[#allocation5 + $0xd0] sm:$0xff]  ;;  %v2435_v32 = vld [vmem:[#allocation5 + $0x240] sm:$0xff] }
0x1958   :  { %v2388_v38 = vmul.f32 %v2386_v25, %v2382_v33  ;;  %v3268_v10 = vpack.c.bf16 %v2412_v55, %v2411_v54  ;;  %v2436_v33 = vld [vmem:[#allocation5 + $0x250] sm:$0xff] }
0x1959   :  { %v2387_v35 = vmul.f32 %v2386_v25, %v2381_v34  ;;  %v2417_v25 = vld [vmem:[#allocation5 + $0x120] sm:$0xff] }
0x195a   :  { %v2394_v42 = vadd.f32 %v2392_v40, %v2388_v38  ;;  %v3280_v34 = vpack.c.bf16 %v2418_v31, %v2417_v25  ;;  %v2419_v38 = vld [vmem:[#allocation5 + $0x140] sm:$0xff] }
0x195b   :  { %v2393_v36 = vadd.f32 %v2392_v40, %v2387_v35  ;;  %v3282_v40 = vpack.c.bf16 %v2436_v33, %v2435_v32  ;;  %v2420_v35 = vld [vmem:[#allocation5 + $0x150] sm:$0xff] }
0x195d   :  { %3127 = vmatprep.mubr.msk.f32.mxu1 %vm57_vm0, %v2393_v36  ;;  %v3284_v36 = vpack.c.bf16 %v2420_v35, %v2419_v38 }
0x195e   :  { %3128 = vmatmul.mubr.msk.f32.vlgmr.msra.gmra.mrb[28].mxu1 %vm57_vm0, %v2394_v42  ;;  %v2437_v42 = vld [vmem:[#allocation5 + $0x260] sm:$0xff] }
0x195f   :  { %2611 = vmatprep.mubr.f32.mxu1 %v3421_v41  ;;  %3253 = vmatpush1.bf16.msra.mxu1 %v3252_v26  ;;  %v3286_v27 = vpack.c.bf16 %v2438_v44, %v2437_v42  ;;  %v2534_v26 = vrot.slane %v2748_v46, %v3506_v28 }
0x1960   :  { %3255 = vmatprep.subr.bf16.mxu1 %v3254_v50 }
0x1963   :  { %3257 = vmatpush1.bf16.msra.mxu1 %v3256_v47 }
0x1964   :  { %3259 = vmatprep.subr.bf16.mxu1 %v3258_v56 }
0x1a31   :  { %v3129_v58 = vpop.f32.mrb[28].mxu1 }
0x1a32   :  { %v2519_v4 = vpop.f32.mrb[29].mxu1  ;;  %v2525_v60 = vadd.f32 %v3129_v58, %v2749_v24 }
0x1a33   :  { %v2520_v59 = vadd.f32 %v2749_v24, %v2519_v4  ;;  %v2754_v4 = vld [vmem:[%s3826_s6 + $0x2] ss:$0 sm:$0xff] }
0x1a35   :  { %3363 = vtanh.f32 %v2520_v59 }
0x1a36   :  { %3365 = vtanh.f32 %v2525_v60 }
0x1a3f   :  { %v3364_v8 = vpop.eup %3363 }
0x1a40   :  { %2752 = vmatmul.mubr.msk.f32.vlgmr.msra.gmra.mrb[30].mxu1 %vm57_vm0, %v3364_v8  ;;  %v3366_v13 = vpop.eup %3365 }
0x1a41   :  { %2617 = vmatprep.mubr.f32.mxu1 %v3421_v41  ;;  %3261 = vmatpush3.bf16.msra.mxu1 %v3260_v3  ;;  %v3272_v41 = vpack.c.bf16 %v2414_v15, %v2413_v14 }
0x1a42   :  { %3263 = vmatprep.subr.bf16.mxu1 %v3262_v5 }
0x1a44   :  { %2753 = vmatmul.mubr.msk.f32.gmra.mrb[32].mxu1 %vm57_vm0, %v3366_v13 }
0x1a45   :  { %3265 = vmatpush3.bf16.msra.mxu1 %v3264_v11 }
0x1a46   :  { %3267 = vmatprep.subr.bf16.mxu1 %v3266_v12 }
0x1a49   :  { %3269 = vmatpush3.bf16.msra.mxu1 %v3268_v10 }
0x1a4a   :  { %3271 = vmatprep.subr.bf16.mxu1 %v3270_v45 }
0x1a4d   :  { %3273 = vmatpush3.bf16.msra.mxu1 %v3272_v41 }
0x1a4e   :  { %3275 = vmatprep.subr.bf16.mxu1 %v3274_v57 }
0x1a51   :  { %3277 = vmatpush3.bf16.msra.mxu1 %v3276_v22 }
0x1a52   :  { %3279 = vmatprep.subr.bf16.mxu1 %v3278_v23 }
0x1a55   :  { %3281 = vmatpush3.bf16.msra.mxu1 %v3280_v34 }
0x1a56   :  { %3283 = vmatprep.subr.bf16.mxu1 %v3282_v40 }
0x1a59   :  { %3285 = vmatpush3.bf16.msra.mxu1 %v3284_v36 }
0x1a5a   :  { %3287 = vmatprep.subr.bf16.mxu1 %v3286_v27 }
0x1a5d   :  { %3289 = vmatpush3.bf16.msra.mxu1 %v3288_v48 }
0x1b13   :  { %v2613_v50 = vpop.f32.mrb[30].mxu1 }
0x1b14   :  { %v2615_v29 = vpop.f32.mrb[31].mxu1  ;;  %v2614_v47 = vadd.f32 %v2613_v50, %v2534_v26 }
0x1b15   :  { %v2616_v43 = vadd.f32 %v2615_v29, %v2538_v49 }
0x1b17   :  { %v2619_v51 = vpop.f32.mrb[32].mxu1  ;;  %2692 = vmatprep.mubr.f32.mxu1 %v2616_v43 }
0x1b18   :  { %v2621_v52 = vpop.f32.mrb[33].mxu1  ;;  %2693 = vmatmul.mubr.f32.vlgmr.msra.gmra.mrb[34].mxu1 %v2614_v47  ;;  %v2620_v24 = vadd.f32 %v2619_v51, %v2534_v26 }
0x1b19   :  { %v2622_v56 = vadd.f32 %v2621_v52, %v2538_v49 }
0x1b1b   :  { %2697 = vmatprep.mubr.f32.mxu1 %v2622_v56 }
0x1b1c   :  { %2698 = vmatmul.mubr.f32.gmra.mrb[36].mxu1 %v2620_v24 }
0x1beb   :  { %v2897_v58 = vpop.f32.mrb[34].mxu1 }
0x1bec   :  { %v2898_v30 = vpop.f32.mrb[35].mxu1 }
0x1bed   :  { %v2899_v59 = vadd.f32 %v2898_v30, %v2897_v58 }
0x1bef   :  { %v2695_v28 = vadd.f32 %v2899_v59, %v2754_v4  ;;  %v2900_v60 = vpop.f32.mrb[36].mxu1 }
0x1bf0   :  { %v2901_v61 = vpop.f32.mrb[37].mxu1 }
0x1bf1   :  { %2703 = vst [vmem:[%s3827_s7] sm:$0xff] %v2695_v28  ;;  %v2902_v62 = vadd.f32 %v2901_v61, %v2900_v60 }
0x1bf3   :  { %v2700_v0 = vadd.f32 %v2902_v62, %v2754_v4 }
0x1bf5   :  { %2704 = vst [vmem:[%s3827_s7 + $0x8] sm:$0xff] %v2700_v0 }
0x1bf6   :  { %2709 = vsyncpa [#allocation4], 1 }
0x1bf7   :  { %2710 = vsyncpa [#allocation6], 1 }

</bundles_post_ra>
